<compile_context>
chip_gen: v5e
topology: v5e:2x2
jax: 0.10.0
libtpu: 0.0.40
codegen_flags: <defaults>
</compile_context>

<pallas_src>
import functools

import jax
import jax.numpy as jnp
from jax import lax
from jax.experimental import pallas as pl
from jax.experimental.pallas import tpu as pltpu


# --------------------------------------------------------------------------------------
# Kernel
# --------------------------------------------------------------------------------------
def _double_conv_kernel(x_ref, b1w_ref, b2w_ref,
                        bias1_ref, g1_ref, be1_ref,
                        bias2_ref, g2_ref, be2_ref,
                        s_ref, st_ref,
                        o_ref,
                        pad1_ref, pad2_ref,
                        *, B, H, Hpad, W, cin, cout, eps, slope, mxu_dtype):
    """One grid step = B images, both conv stages fused.

    Lane-packed layout: activations are 2-D tiles (rows = image-stacked H, lanes = W*C).

    x_ref    : (B, H, W*cin)        input images (lane-packed rows)
    b1w_ref  : (3, W*cin,  W*cout)  banded conv-1 weights (x-halo folded in), one slab per dy
    b2w_ref  : (3, W*cout, W*cout)  banded conv-2 weights
    bias/g/be: (1, W*cout)          conv bias / GN gamma / GN beta tiled over W (f32)
    s_ref    : (W*cout, G)          one-hot group matrix scaled by 1/(H*W*cpg)  (group means)
    st_ref   : (G, W*cout)          one-hot transpose (broadcast group stats back to lanes)
    o_ref    : (B, H, W*cout)       lane-dense output
    pad1_ref : (B*Hpad, W*cin)   f32 VMEM scratch: per image rows [b*Hpad+1, b*Hpad+1+H) = data,
    pad2_ref : (B*Hpad, W*cout)  f32 rest of the block zero (row halo); stage-2 never hits HBM.
    """
    f32 = jnp.float32
    WC = W * cout
    WCin = W * cin
    Mrows = B * Hpad
    Mout = Mrows - 2            # banded-matmul output rows; junk rows per image are skipped

    def conv3(pad_ref, bw_ref):
        # 3 banded matmuls (one per kernel row dy): (Mout, K) @ (K, W*cout), f32 accumulation.
        p = pad_ref[...].astype(mxu_dtype)
        acc = jnp.dot(p[0:Mout], bw_ref[0], preferred_element_type=f32)
        acc = acc + jnp.dot(p[1:1 + Mout], bw_ref[1], preferred_element_type=f32)
        acc = acc + jnp.dot(p[2:2 + Mout], bw_ref[2], preferred_element_type=f32)
        return acc              # (Mout, WC) f32; valid rows for image b: [b*Hpad, b*Hpad+H)

    def gn_lrelu(acc, bias_ref, g_ref, be_ref):
        acc = acc + bias_ref[...]                                     # conv bias (per channel)
        blocks = [acc[b * Hpad:b * Hpad + H, :] for b in range(B)]    # aligned per-image slices
        rs = jnp.concatenate(
            [jnp.sum(blk, axis=0, keepdims=True) for blk in blocks], axis=0)         # (B, WC)
        rs2 = jnp.concatenate(
            [jnp.sum(blk * blk, axis=0, keepdims=True) for blk in blocks], axis=0)   # (B, WC)
        stats = jnp.concatenate([rs, rs2], axis=0)                                   # (2B, WC)
        gstats = jnp.dot(stats, s_ref[...], preferred_element_type=f32)   # (2B, G) group means
        back = jnp.dot(gstats, st_ref[...], preferred_element_type=f32)   # (2B, WC) per-lane
        mean, mean2 = back[:B], back[B:]
        var = mean2 - mean * mean                                     # biased var (PyTorch GN)
        inv = lax.rsqrt(var + eps)
        scale = inv * g_ref[...]                                      # (B, WC)
        shift = be_ref[...] - mean * scale                            # (B, WC)
        outs = []
        for b in range(B):
            y = blocks[b] * scale[b:b + 1, :] + shift[b:b + 1, :]     # FMA form
            outs.append(jnp.where(y > 0, y, slope * y))               # LeakyReLU(0.2)
        return outs                                                   # B x (H, WC) f32

    # Zero ONLY the halo / filler rows each step (interior is fully overwritten below).
    for b in range(B):
        base = b * Hpad
        pad1_ref[base:base + 1, :] = jnp.zeros((1, WCin), pad1_ref.dtype)
        pad1_ref[base + H + 1:base + Hpad, :] = jnp.zeros((Hpad - H - 1, WCin), pad1_ref.dtype)
        pad2_ref[base:base + 1, :] = jnp.zeros((1, WC), pad2_ref.dtype)
        pad2_ref[base + H + 1:base + Hpad, :] = jnp.zeros((Hpad - H - 1, WC), pad2_ref.dtype)
        # lane-aligned, full-width interior store (x-halo lives in the weights now)
        pad1_ref[base + 1:base + 1 + H, :] = x_ref[b].astype(pad1_ref.dtype)

    # ---------------- stage 1: conv3x3 + GN + LeakyReLU ----------------
    y1 = gn_lrelu(conv3(pad1_ref, b1w_ref), bias1_ref, g1_ref, be1_ref)

    # ---------------- stage 2 (intermediate stays in VMEM) -------------
    for b in range(B):
        pad2_ref[b * Hpad + 1:b * Hpad + 1 + H, :] = y1[b]
    y2 = gn_lrelu(conv3(pad2_ref, b2w_ref), bias2_ref, g2_ref, be2_ref)

    # lane-dense store: last dim = W*cout (=128 at the test size)
    for b in range(B):
        o_ref[b] = y2[b].astype(o_ref.dtype)


# --------------------------------------------------------------------------------------
# Host-side weight preparation
# --------------------------------------------------------------------------------------
def _band_weights(w, W_sp):
    """PyTorch conv weight (cout, cin, 3, 3) -> 3 banded matrices B[dy] of shape (W*cin, W*cout)
    with the x-direction zero-padding folded in, so that a 3x3 'same' conv in the lane-packed
    (w, c) layout becomes 3 dense matmuls (one per kernel row dy):

        B[dy, wi*cin + ci, wo*cout + co] = w[co, ci, dy, wi - wo + 1]  if |wi - wo| <= 1 else 0
    """
    cout, cin = w.shape[0], w.shape[1]
    L, Mo = W_sp * cin, W_sp * cout
    wi = jnp.arange(L) // cin                      # source column per input lane
    ci = jnp.arange(L) % cin
    wo = jnp.arange(Mo) // cout                    # output column per output lane
    co = jnp.arange(Mo) % cout
    dx = wi[:, None] - wo[None, :] + 1             # (L, Mo) kernel x-index
    valid = (dx >= 0) & (dx <= 2)
    dxc = jnp.clip(dx, 0, 2)
    wt = jnp.transpose(w, (2, 3, 1, 0))            # (dy, dx, cin, cout)
    vals = wt[:, dxc, ci[:, None], co[None, :]]    # (3, L, Mo)
    return jnp.where(valid[None], vals, 0.0).astype(jnp.float32)


# --------------------------------------------------------------------------------------
# Wrapper (PyTorch-equivalent DoubleConv2d forward)
# --------------------------------------------------------------------------------------
def double_conv2d(x_nchw, params1, params2, *, eps=1e-5, slope=0.2,
                  mxu_dtype=jnp.bfloat16, max_block_rows=256):
    """params = (w (Cout,Cin,3,3), b (Cout,), gamma (Cout,), beta (Cout,)) per stage.

    mxu_dtype=jnp.bfloat16 -> bf16 MXU operands, f32 accumulation / GN math (perf path);
    mxu_dtype=jnp.float32  -> exact f32 path (correctness oracle).
    """
    N, cin, H, W = x_nchw.shape
    cout = params1[0].shape[0]
    assert cout % 4 == 0, "GroupNorm(out//4, out) requires out_channels % 4 == 0"
    groups = cout // 4
    cpg = 4
    WC = W * cout
    WCin = W * cin
    Hpad = ((H + 2 + 7) // 8) * 8                  # per-image row block (8-aligned slices)

    # Batch B images per grid step -> matmul M rises from H to ~B*Hpad, fewer grid steps.
    B = 1
    for cand in range(1, N + 1):
        if N % cand == 0 and cand * Hpad <= max_block_rows:
            B = cand
    # TODO(synk): for v7x small-batch inference (grid == 1) add a second "parallel" grid axis
    # splitting H into row blocks so both TensorCores get work.

    # NCHW -> NHWC -> lane-packed (N, H, W*cin).  (Bit-identical reshape, fused by XLA.)
    x2d = jnp.transpose(x_nchw, (0, 2, 3, 1)).reshape(N, H, WCin)

    def prep(params):
        w, b, gamma, beta = params
        bw = _band_weights(w, W).astype(mxu_dtype)
        bt = jnp.tile(b.reshape(1, cout).astype(jnp.float32), (1, W))
        gt = jnp.tile(gamma.reshape(1, cout).astype(jnp.float32), (1, W))
        bet = jnp.tile(beta.reshape(1, cout).astype(jnp.float32), (1, W))
        return bw, bt, gt, bet

    b1w, bias1, g1, be1 = prep(params1)
    b2w, bias2, g2, be2 = prep(params2)

    # Skinny group matrices (replace the old quadratic (WC,WC) mix matrix).
    lane_group = (jnp.arange(WC) % cout) // cpg
    one_hot = (lane_group[:, None] == jnp.arange(groups)[None, :]).astype(jnp.float32)
    s_mat = one_hot / float(H * W * cpg)           # (WC, G): group-sum with 1/n folded in
    st_mat = one_hot.T                             # (G, WC): broadcast group stats back

    kernel = functools.partial(
        _double_conv_kernel, B=B, H=H, Hpad=Hpad, W=W, cin=cin, cout=cout,
        eps=eps, slope=slope, mxu_dtype=mxu_dtype)

    const2d = pl.BlockSpec((1, WC), lambda n: (0, 0))
    out2d = pl.pallas_call(
        kernel,
        out_shape=jax.ShapeDtypeStruct((N, H, WC), x_nchw.dtype),
        grid_spec=pltpu.PrefetchScalarGridSpec(
            num_scalar_prefetch=0,
            grid=(N // B,),
            in_specs=[
                pl.BlockSpec((B, H, WCin), lambda n: (n, 0, 0)),      # x (lane-packed rows)
                pl.BlockSpec((3, WCin, WC), lambda n: (0, 0, 0)),     # banded W1 (VMEM resident)
                pl.BlockSpec((3, WC, WC), lambda n: (0, 0, 0)),       # banded W2
                const2d, const2d, const2d,                            # bias1, gamma1, beta1
                const2d, const2d, const2d,                            # bias2, gamma2, beta2
                pl.BlockSpec((WC, groups), lambda n: (0, 0)),         # group-sum matrix
                pl.BlockSpec((groups, WC), lambda n: (0, 0)),         # broadcast-back matrix
            ],
            out_specs=pl.BlockSpec((B, H, WC), lambda n: (n, 0, 0)),  # lane-dense output
            scratch_shapes=[
                pltpu.VMEM((B * Hpad, WCin), jnp.float32),  # stage-1 halo buffer (f32)
                pltpu.VMEM((B * Hpad, WC), jnp.float32),    # stage-2 halo buffer (fused interm.)
            ],
        ),
        compiler_params=pltpu.CompilerParams(dimension_semantics=("parallel",)),
    )(x2d, b1w, b2w, bias1, g1, be1, bias2, g2, be2, s_mat, st_mat)

    # (N, H, W*cout) is bit-identical to NHWC; back to PyTorch NCHW.
    return jnp.transpose(out2d.reshape(N, H, W, cout), (0, 3, 1, 2))


# --------------------------------------------------------------------------------------
# Pure-JAX reference (verification only)
# --------------------------------------------------------------------------------------
def _ref_forward(x_nchw, params_list, eps=1e-5, slope=0.2):
    x = jnp.transpose(x_nchw, (0, 2, 3, 1))
    for (w, b, gamma, beta) in params_list:
        cout = w.shape[0]
        y = lax.conv_general_dilated(
            x, jnp.transpose(w, (2, 3, 1, 0)), window_strides=(1, 1), padding="SAME",
            dimension_numbers=("NHWC", "HWIO", "NHWC")) + b
        N, H, W, C = y.shape
        G = cout // 4
        yg = y.reshape(N, H, W, G, C // G)
        mean = yg.mean(axis=(1, 2, 4), keepdims=True)
        var = yg.var(axis=(1, 2, 4), keepdims=True)
        yn = ((yg - mean) / jnp.sqrt(var + eps)).reshape(N, H, W, C) * gamma + beta
        x = jnp.where(yn > 0, yn, slope * yn)
    return jnp.transpose(x, (0, 3, 1, 2))


def _init_conv(key, cin, cout):
    k1, k2 = jax.random.split(key)
    fan_in = cin * 9
    bound = 1.0 / (fan_in ** 0.5)
    w = jax.random.uniform(k1, (cout, cin, 3, 3), jnp.float32, -bound, bound)
    b = jax.random.uniform(k2, (cout,), jnp.float32, -bound, bound)
    return w, b


if __name__ == "__main__":
    key = jax.random.PRNGKey(0)
    kx, kc1, kc2, kg1, kb1, kg2, kb2 = jax.random.split(key, 7)

    N, Cin, H, W = 2, 4, 16, 16
    Cout = 8  # must be divisible by 4 (GroupNorm(out//4, out))

    x = jax.random.normal(kx, (N, Cin, H, W), jnp.float32)
    w1, b1 = _init_conv(kc1, Cin, Cout)
    w2, b2 = _init_conv(kc2, Cout, Cout)
    g1 = 1.0 + 0.1 * jax.random.normal(kg1, (Cout,), jnp.float32)
    be1 = 0.1 * jax.random.normal(kb1, (Cout,), jnp.float32)
    g2 = 1.0 + 0.1 * jax.random.normal(kg2, (Cout,), jnp.float32)
    be2 = 0.1 * jax.random.normal(kb2, (Cout,), jnp.float32)
    p1, p2 = (w1, b1, g1, be1), (w2, b2, g2, be2)

    ref = _ref_forward(x, [p1, p2])

    # Exact-math path (f32 MXU operands): tight correctness check.
    out_f32 = jax.block_until_ready(double_conv2d(x, p1, p2, mxu_dtype=jnp.float32))
    assert out_f32.shape == (N, Cout, H, W), out_f32.shape
    err = float(jnp.max(jnp.abs(out_f32 - ref)))
    assert err < 2e-3, f"f32 path mismatch vs reference: {err}"

    # Perf path (bf16 MXU operands, f32 accumulation / GN math): looser tolerance.
    out_bf16 = jax.block_until_ready(double_conv2d(x, p1, p2, mxu_dtype=jnp.bfloat16))
    assert out_bf16.shape == (N, Cout, H, W), out_bf16.shape
    err_bf = float(jnp.max(jnp.abs(out_bf16 - ref)))
    assert err_bf < 2e-1, f"bf16 path mismatch vs reference: {err_bf}"

    print("KERNEL_OK")
</pallas_src>

<mosaic_0001>
module attributes {stable_mosaic.version = 11 : i64} {
  func.func @_double_conv_kernel(%arg0: i32, %arg1: memref<2x16x64xf32, #tpu.memory_space<vmem>>, %arg2: memref<3x64x128xf32, #tpu.memory_space<vmem>>, %arg3: memref<3x128x128xf32, #tpu.memory_space<vmem>>, %arg4: memref<1x128xf32, #tpu.memory_space<vmem>>, %arg5: memref<1x128xf32, #tpu.memory_space<vmem>>, %arg6: memref<1x128xf32, #tpu.memory_space<vmem>>, %arg7: memref<1x128xf32, #tpu.memory_space<vmem>>, %arg8: memref<1x128xf32, #tpu.memory_space<vmem>>, %arg9: memref<1x128xf32, #tpu.memory_space<vmem>>, %arg10: memref<128x2xf32, #tpu.memory_space<vmem>>, %arg11: memref<2x128xf32, #tpu.memory_space<vmem>>, %arg12: memref<2x16x128xf32, #tpu.memory_space<vmem>>, %arg13: memref<48x64xf32, #tpu.memory_space<vmem>>, %arg14: memref<48x128xf32, #tpu.memory_space<vmem>>) attributes {dimension_semantics = [#tpu.dimension_semantics<parallel>], iteration_bounds = array<i64: 1>, scalar_prefetch = 0 : i64, scratch_operands = 2 : i64, tpu.core_type = #tpu.core_type<tc>, window_params = [{transform_indices = @transform_0, window_bounds = array<i64: 2, 16, 64>}, {pipeline_mode = #tpu.pipeline_mode<synchronous>, transform_indices = @transform_1, window_bounds = array<i64: 3, 64, 128>}, {pipeline_mode = #tpu.pipeline_mode<synchronous>, transform_indices = @transform_2, window_bounds = array<i64: 3, 128, 128>}, {pipeline_mode = #tpu.pipeline_mode<synchronous>, transform_indices = @transform_3, window_bounds = array<i64: 1, 128>}, {pipeline_mode = #tpu.pipeline_mode<synchronous>, transform_indices = @transform_4, window_bounds = array<i64: 1, 128>}, {pipeline_mode = #tpu.pipeline_mode<synchronous>, transform_indices = @transform_5, window_bounds = array<i64: 1, 128>}, {pipeline_mode = #tpu.pipeline_mode<synchronous>, transform_indices = @transform_6, window_bounds = array<i64: 1, 128>}, {pipeline_mode = #tpu.pipeline_mode<synchronous>, transform_indices = @transform_7, window_bounds = array<i64: 1, 128>}, {pipeline_mode = #tpu.pipeline_mode<synchronous>, transform_indices = @transform_8, window_bounds = array<i64: 1, 128>}, {pipeline_mode = #tpu.pipeline_mode<synchronous>, transform_indices = @transform_9, window_bounds = array<i64: 128, 2>}, {pipeline_mode = #tpu.pipeline_mode<synchronous>, transform_indices = @transform_10, window_bounds = array<i64: 2, 128>}, {transform_indices = @transform_11, window_bounds = array<i64: 2, 16, 128>}]} {
    %cst = arith.constant 0.000000e+00 : f32
    %0 = vector.broadcast %cst : f32 to vector<1x64xf32>
    %c0 = arith.constant 0 : index
    %c0_0 = arith.constant 0 : index
    %1 = vector.load %arg13[%c0, %c0_0] : memref<48x64xf32, #tpu.memory_space<vmem>>, vector<1x64xf32>
    tpu.vector_store %arg13[%c0, %c0_0], %0 {strides = array<i32>} : memref<48x64xf32, #tpu.memory_space<vmem>>, vector<1x64xf32>,
    %cst_1 = arith.constant 0.000000e+00 : f32
    %2 = vector.broadcast %cst_1 : f32 to vector<7x64xf32>
    %c17 = arith.constant 17 : index
    %c0_2 = arith.constant 0 : index
    %3 = vector.load %arg13[%c17, %c0_2] : memref<48x64xf32, #tpu.memory_space<vmem>>, vector<7x64xf32>
    tpu.vector_store %arg13[%c17, %c0_2], %2 {strides = array<i32>} : memref<48x64xf32, #tpu.memory_space<vmem>>, vector<7x64xf32>,
    %cst_3 = arith.constant 0.000000e+00 : f32
    %4 = vector.broadcast %cst_3 : f32 to vector<1x128xf32>
    %c0_4 = arith.constant 0 : index
    %c0_5 = arith.constant 0 : index
    %5 = vector.load %arg14[%c0_4, %c0_5] : memref<48x128xf32, #tpu.memory_space<vmem>>, vector<1x128xf32>
    tpu.vector_store %arg14[%c0_4, %c0_5], %4 {strides = array<i32>} : memref<48x128xf32, #tpu.memory_space<vmem>>, vector<1x128xf32>,
    %cst_6 = arith.constant 0.000000e+00 : f32
    %6 = vector.broadcast %cst_6 : f32 to vector<7x128xf32>
    %c17_7 = arith.constant 17 : index
    %c0_8 = arith.constant 0 : index
    %7 = vector.load %arg14[%c17_7, %c0_8] : memref<48x128xf32, #tpu.memory_space<vmem>>, vector<7x128xf32>
    tpu.vector_store %arg14[%c17_7, %c0_8], %6 {strides = array<i32>} : memref<48x128xf32, #tpu.memory_space<vmem>>, vector<7x128xf32>,
    %c0_9 = arith.constant 0 : index
    %c0_10 = arith.constant 0 : index
    %c0_11 = arith.constant 0 : index
    %8 = vector.load %arg1[%c0_9, %c0_10, %c0_11] : memref<2x16x64xf32, #tpu.memory_space<vmem>>, vector<1x16x64xf32>
    %9 = vector.shape_cast %8 : vector<1x16x64xf32> to vector<16x64xf32>
    %c1 = arith.constant 1 : index
    %c0_12 = arith.constant 0 : index
    %10 = vector.load %arg13[%c1, %c0_12] : memref<48x64xf32, #tpu.memory_space<vmem>>, vector<16x64xf32>
    tpu.vector_store %arg13[%c1, %c0_12], %9 {strides = array<i32>} : memref<48x64xf32, #tpu.memory_space<vmem>>, vector<16x64xf32>,
    %cst_13 = arith.constant 0.000000e+00 : f32
    %11 = vector.broadcast %cst_13 : f32 to vector<1x64xf32>
    %c24 = arith.constant 24 : index
    %c0_14 = arith.constant 0 : index
    %12 = vector.load %arg13[%c24, %c0_14] : memref<48x64xf32, #tpu.memory_space<vmem>>, vector<1x64xf32>
    tpu.vector_store %arg13[%c24, %c0_14], %11 {strides = array<i32>} : memref<48x64xf32, #tpu.memory_space<vmem>>, vector<1x64xf32>,
    %cst_15 = arith.constant 0.000000e+00 : f32
    %13 = vector.broadcast %cst_15 : f32 to vector<7x64xf32>
    %c41 = arith.constant 41 : index
    %c0_16 = arith.constant 0 : index
    %14 = vector.load %arg13[%c41, %c0_16] : memref<48x64xf32, #tpu.memory_space<vmem>>, vector<7x64xf32>
    tpu.vector_store %arg13[%c41, %c0_16], %13 {strides = array<i32>} : memref<48x64xf32, #tpu.memory_space<vmem>>, vector<7x64xf32>,
    %cst_17 = arith.constant 0.000000e+00 : f32
    %15 = vector.broadcast %cst_17 : f32 to vector<1x128xf32>
    %c24_18 = arith.constant 24 : index
    %c0_19 = arith.constant 0 : index
    %16 = vector.load %arg14[%c24_18, %c0_19] : memref<48x128xf32, #tpu.memory_space<vmem>>, vector<1x128xf32>
    tpu.vector_store %arg14[%c24_18, %c0_19], %15 {strides = array<i32>} : memref<48x128xf32, #tpu.memory_space<vmem>>, vector<1x128xf32>,
    %cst_20 = arith.constant 0.000000e+00 : f32
    %17 = vector.broadcast %cst_20 : f32 to vector<7x128xf32>
    %c41_21 = arith.constant 41 : index
    %c0_22 = arith.constant 0 : index
    %18 = vector.load %arg14[%c41_21, %c0_22] : memref<48x128xf32, #tpu.memory_space<vmem>>, vector<7x128xf32>
    tpu.vector_store %arg14[%c41_21, %c0_22], %17 {strides = array<i32>} : memref<48x128xf32, #tpu.memory_space<vmem>>, vector<7x128xf32>,
    %c1_23 = arith.constant 1 : index
    %c0_24 = arith.constant 0 : index
    %c0_25 = arith.constant 0 : index
    %19 = vector.load %arg1[%c1_23, %c0_24, %c0_25] : memref<2x16x64xf32, #tpu.memory_space<vmem>>, vector<1x16x64xf32>
    %20 = vector.shape_cast %19 : vector<1x16x64xf32> to vector<16x64xf32>
    %c25 = arith.constant 25 : index
    %c0_26 = arith.constant 0 : index
    %21 = vector.load %arg13[%c25, %c0_26] : memref<48x64xf32, #tpu.memory_space<vmem>>, vector<16x64xf32>
    tpu.vector_store %arg13[%c25, %c0_26], %20 {strides = array<i32>} : memref<48x64xf32, #tpu.memory_space<vmem>>, vector<16x64xf32>,
    %c0_27 = arith.constant 0 : index
    %c0_28 = arith.constant 0 : index
    %22 = vector.load %arg13[%c0_27, %c0_28] : memref<48x64xf32, #tpu.memory_space<vmem>>, vector<48x64xf32>
    %23 = vector.extract_strided_slice %22 {offsets = [0, 0], sizes = [46, 64], strides = [1, 1]} : vector<48x64xf32> to vector<46x64xf32>
    %c0_29 = arith.constant 0 : index
    %c0_30 = arith.constant 0 : index
    %c0_31 = arith.constant 0 : index
    %24 = vector.load %arg2[%c0_29, %c0_30, %c0_31] : memref<3x64x128xf32, #tpu.memory_space<vmem>>, vector<1x64x128xf32>
    %25 = vector.shape_cast %24 : vector<1x64x128xf32> to vector<64x128xf32>
    %cst_32 = arith.constant dense<0.000000e+00> : vector<46x128xf32>
    %26 = tpu.matmul %23, %25, %cst_32 {dimension_numbers = #tpu.dot_dimension_numbers<[1], [0], [0], [1], [0, 0, 1, 1], [], []>} : vector<46x64xf32>, vector<64x128xf32>, vector<46x128xf32> -> vector<46x128xf32>
    %27 = vector.extract_strided_slice %22 {offsets = [1, 0], sizes = [46, 64], strides = [1, 1]} : vector<48x64xf32> to vector<46x64xf32>
    %c1_33 = arith.constant 1 : index
    %c0_34 = arith.constant 0 : index
    %c0_35 = arith.constant 0 : index
    %28 = vector.load %arg2[%c1_33, %c0_34, %c0_35] : memref<3x64x128xf32, #tpu.memory_space<vmem>>, vector<1x64x128xf32>
    %29 = vector.shape_cast %28 : vector<1x64x128xf32> to vector<64x128xf32>
    %cst_36 = arith.constant dense<0.000000e+00> : vector<46x128xf32>
    %30 = tpu.matmul %27, %29, %cst_36 {dimension_numbers = #tpu.dot_dimension_numbers<[1], [0], [0], [1], [0, 0, 1, 1], [], []>} : vector<46x64xf32>, vector<64x128xf32>, vector<46x128xf32> -> vector<46x128xf32>
    %31 = arith.addf %26, %30 : vector<46x128xf32>
    %32 = vector.extract_strided_slice %22 {offsets = [2, 0], sizes = [46, 64], strides = [1, 1]} : vector<48x64xf32> to vector<46x64xf32>
    %c2 = arith.constant 2 : index
    %c0_37 = arith.constant 0 : index
    %c0_38 = arith.constant 0 : index
    %33 = vector.load %arg2[%c2, %c0_37, %c0_38] : memref<3x64x128xf32, #tpu.memory_space<vmem>>, vector<1x64x128xf32>
    %34 = vector.shape_cast %33 : vector<1x64x128xf32> to vector<64x128xf32>
    %cst_39 = arith.constant dense<0.000000e+00> : vector<46x128xf32>
    %35 = tpu.matmul %32, %34, %cst_39 {dimension_numbers = #tpu.dot_dimension_numbers<[1], [0], [0], [1], [0, 0, 1, 1], [], []>} : vector<46x64xf32>, vector<64x128xf32>, vector<46x128xf32> -> vector<46x128xf32>
    %36 = arith.addf %31, %35 : vector<46x128xf32>
    %c0_40 = arith.constant 0 : index
    %c0_41 = arith.constant 0 : index
    %37 = vector.load %arg4[%c0_40, %c0_41] : memref<1x128xf32, #tpu.memory_space<vmem>>, vector<1x128xf32>
    %38 = vector.broadcast %37 : vector<1x128xf32> to vector<46x128xf32>
    %39 = arith.addf %36, %38 : vector<46x128xf32>
    %40 = vector.extract_strided_slice %39 {offsets = [0, 0], sizes = [16, 128], strides = [1, 1]} : vector<46x128xf32> to vector<16x128xf32>
    %41 = vector.extract_strided_slice %39 {offsets = [24, 0], sizes = [16, 128], strides = [1, 1]} : vector<46x128xf32> to vector<16x128xf32>
    %cst_42 = arith.constant dense<0.000000e+00> : vector<128xf32>
    %42 = vector.multi_reduction <add>, %40, %cst_42 [0] : vector<16x128xf32> to vector<128xf32>
    %43 = vector.shape_cast %42 : vector<128xf32> to vector<1x128xf32>
    %cst_43 = arith.constant dense<0.000000e+00> : vector<128xf32>
    %44 = vector.multi_reduction <add>, %41, %cst_43 [0] : vector<16x128xf32> to vector<128xf32>
    %45 = vector.shape_cast %44 : vector<128xf32> to vector<1x128xf32>
    %46 = tpu.concatenate %43, %45 in 0 : vector<1x128xf32>, vector<1x128xf32> -> vector<2x128xf32>
    %47 = arith.mulf %40, %40 : vector<16x128xf32>
    %cst_44 = arith.constant dense<0.000000e+00> : vector<128xf32>
    %48 = vector.multi_reduction <add>, %47, %cst_44 [0] : vector<16x128xf32> to vector<128xf32>
    %49 = vector.shape_cast %48 : vector<128xf32> to vector<1x128xf32>
    %50 = arith.mulf %41, %41 : vector<16x128xf32>
    %cst_45 = arith.constant dense<0.000000e+00> : vector<128xf32>
    %51 = vector.multi_reduction <add>, %50, %cst_45 [0] : vector<16x128xf32> to vector<128xf32>
    %52 = vector.shape_cast %51 : vector<128xf32> to vector<1x128xf32>
    %53 = tpu.concatenate %49, %52 in 0 : vector<1x128xf32>, vector<1x128xf32> -> vector<2x128xf32>
    %54 = tpu.concatenate %46, %53 in 0 : vector<2x128xf32>, vector<2x128xf32> -> vector<4x128xf32>
    %c0_46 = arith.constant 0 : index
    %c0_47 = arith.constant 0 : index
    %55 = vector.load %arg10[%c0_46, %c0_47] : memref<128x2xf32, #tpu.memory_space<vmem>>, vector<128x2xf32>
    %cst_48 = arith.constant dense<0.000000e+00> : vector<4x2xf32>
    %56 = tpu.matmul %54, %55, %cst_48 {dimension_numbers = #tpu.dot_dimension_numbers<[1], [0], [0], [1], [0, 0, 1, 1], [], []>} : vector<4x128xf32>, vector<128x2xf32>, vector<4x2xf32> -> vector<4x2xf32>
    %c0_49 = arith.constant 0 : index
    %c0_50 = arith.constant 0 : index
    %57 = vector.load %arg11[%c0_49, %c0_50] : memref<2x128xf32, #tpu.memory_space<vmem>>, vector<2x128xf32>
    %cst_51 = arith.constant dense<0.000000e+00> : vector<4x128xf32>
    %58 = tpu.matmul %56, %57, %cst_51 {dimension_numbers = #tpu.dot_dimension_numbers<[1], [0], [0], [1], [0, 0, 1, 1], [], []>} : vector<4x2xf32>, vector<2x128xf32>, vector<4x128xf32> -> vector<4x128xf32>
    %59 = vector.extract_strided_slice %58 {offsets = [0, 0], sizes = [2, 128], strides = [1, 1]} : vector<4x128xf32> to vector<2x128xf32>
    %60 = vector.extract_strided_slice %58 {offsets = [2, 0], sizes = [2, 128], strides = [1, 1]} : vector<4x128xf32> to vector<2x128xf32>
    %61 = arith.mulf %59, %59 : vector<2x128xf32>
    %62 = arith.subf %60, %61 : vector<2x128xf32>
    %cst_52 = arith.constant 9.99999974E-6 : f32
    %63 = vector.broadcast %cst_52 : f32 to vector<2x128xf32>
    %64 = arith.addf %62, %63 : vector<2x128xf32>
    %65 = math.rsqrt %64 : vector<2x128xf32>
    %c0_53 = arith.constant 0 : index
    %c0_54 = arith.constant 0 : index
    %66 = vector.load %arg5[%c0_53, %c0_54] : memref<1x128xf32, #tpu.memory_space<vmem>>, vector<1x128xf32>
    %67 = vector.broadcast %66 : vector<1x128xf32> to vector<2x128xf32>
    %68 = arith.mulf %65, %67 : vector<2x128xf32>
    %c0_55 = arith.constant 0 : index
    %c0_56 = arith.constant 0 : index
    %69 = vector.load %arg6[%c0_55, %c0_56] : memref<1x128xf32, #tpu.memory_space<vmem>>, vector<1x128xf32>
    %70 = arith.mulf %59, %68 : vector<2x128xf32>
    %71 = vector.broadcast %69 : vector<1x128xf32> to vector<2x128xf32>
    %72 = arith.subf %71, %70 : vector<2x128xf32>
    %73 = vector.extract_strided_slice %68 {offsets = [0, 0], sizes = [1, 128], strides = [1, 1]} : vector<2x128xf32> to vector<1x128xf32>
    %74 = vector.broadcast %73 : vector<1x128xf32> to vector<16x128xf32>
    %75 = arith.mulf %40, %74 : vector<16x128xf32>
    %76 = vector.extract_strided_slice %72 {offsets = [0, 0], sizes = [1, 128], strides = [1, 1]} : vector<2x128xf32> to vector<1x128xf32>
    %77 = vector.broadcast %76 : vector<1x128xf32> to vector<16x128xf32>
    %78 = arith.addf %75, %77 : vector<16x128xf32>
    %cst_57 = arith.constant 0.000000e+00 : f32
    %79 = vector.broadcast %cst_57 : f32 to vector<16x128xf32>
    %80 = arith.cmpf ogt, %78, %79 : vector<16x128xf32>
    %cst_58 = arith.constant 2.000000e-01 : f32
    %81 = vector.broadcast %cst_58 : f32 to vector<16x128xf32>
    %82 = arith.mulf %81, %78 : vector<16x128xf32>
    %83 = arith.select %80, %78, %82 : vector<16x128xi1>, vector<16x128xf32>
    %84 = vector.extract_strided_slice %68 {offsets = [1, 0], sizes = [1, 128], strides = [1, 1]} : vector<2x128xf32> to vector<1x128xf32>
    %85 = vector.broadcast %84 : vector<1x128xf32> to vector<16x128xf32>
    %86 = arith.mulf %41, %85 : vector<16x128xf32>
    %87 = vector.extract_strided_slice %72 {offsets = [1, 0], sizes = [1, 128], strides = [1, 1]} : vector<2x128xf32> to vector<1x128xf32>
    %88 = vector.broadcast %87 : vector<1x128xf32> to vector<16x128xf32>
    %89 = arith.addf %86, %88 : vector<16x128xf32>
    %cst_59 = arith.constant 0.000000e+00 : f32
    %90 = vector.broadcast %cst_59 : f32 to vector<16x128xf32>
    %91 = arith.cmpf ogt, %89, %90 : vector<16x128xf32>
    %cst_60 = arith.constant 2.000000e-01 : f32
    %92 = vector.broadcast %cst_60 : f32 to vector<16x128xf32>
    %93 = arith.mulf %92, %89 : vector<16x128xf32>
    %94 = arith.select %91, %89, %93 : vector<16x128xi1>, vector<16x128xf32>
    %c1_61 = arith.constant 1 : index
    %c0_62 = arith.constant 0 : index
    %95 = vector.load %arg14[%c1_61, %c0_62] : memref<48x128xf32, #tpu.memory_space<vmem>>, vector<16x128xf32>
    tpu.vector_store %arg14[%c1_61, %c0_62], %83 {strides = array<i32>} : memref<48x128xf32, #tpu.memory_space<vmem>>, vector<16x128xf32>,
    %c25_63 = arith.constant 25 : index
    %c0_64 = arith.constant 0 : index
    %96 = vector.load %arg14[%c25_63, %c0_64] : memref<48x128xf32, #tpu.memory_space<vmem>>, vector<16x128xf32>
    tpu.vector_store %arg14[%c25_63, %c0_64], %94 {strides = array<i32>} : memref<48x128xf32, #tpu.memory_space<vmem>>, vector<16x128xf32>,
    %c0_65 = arith.constant 0 : index
    %c0_66 = arith.constant 0 : index
    %97 = vector.load %arg14[%c0_65, %c0_66] : memref<48x128xf32, #tpu.memory_space<vmem>>, vector<48x128xf32>
    %98 = vector.extract_strided_slice %97 {offsets = [0, 0], sizes = [46, 128], strides = [1, 1]} : vector<48x128xf32> to vector<46x128xf32>
    %c0_67 = arith.constant 0 : index
    %c0_68 = arith.constant 0 : index
    %c0_69 = arith.constant 0 : index
    %99 = vector.load %arg3[%c0_67, %c0_68, %c0_69] : memref<3x128x128xf32, #tpu.memory_space<vmem>>, vector<1x128x128xf32>
    %100 = vector.shape_cast %99 : vector<1x128x128xf32> to vector<128x128xf32>
    %cst_70 = arith.constant dense<0.000000e+00> : vector<46x128xf32>
    %101 = tpu.matmul %98, %100, %cst_70 {dimension_numbers = #tpu.dot_dimension_numbers<[1], [0], [0], [1], [0, 0, 1, 1], [], []>} : vector<46x128xf32>, vector<128x128xf32>, vector<46x128xf32> -> vector<46x128xf32>
    %102 = vector.extract_strided_slice %97 {offsets = [1, 0], sizes = [46, 128], strides = [1, 1]} : vector<48x128xf32> to vector<46x128xf32>
    %c1_71 = arith.constant 1 : index
    %c0_72 = arith.constant 0 : index
    %c0_73 = arith.constant 0 : index
    %103 = vector.load %arg3[%c1_71, %c0_72, %c0_73] : memref<3x128x128xf32, #tpu.memory_space<vmem>>, vector<1x128x128xf32>
    %104 = vector.shape_cast %103 : vector<1x128x128xf32> to vector<128x128xf32>
    %cst_74 = arith.constant dense<0.000000e+00> : vector<46x128xf32>
    %105 = tpu.matmul %102, %104, %cst_74 {dimension_numbers = #tpu.dot_dimension_numbers<[1], [0], [0], [1], [0, 0, 1, 1], [], []>} : vector<46x128xf32>, vector<128x128xf32>, vector<46x128xf32> -> vector<46x128xf32>
    %106 = arith.addf %101, %105 : vector<46x128xf32>
    %107 = vector.extract_strided_slice %97 {offsets = [2, 0], sizes = [46, 128], strides = [1, 1]} : vector<48x128xf32> to vector<46x128xf32>
    %c2_75 = arith.constant 2 : index
    %c0_76 = arith.constant 0 : index
    %c0_77 = arith.constant 0 : index
    %108 = vector.load %arg3[%c2_75, %c0_76, %c0_77] : memref<3x128x128xf32, #tpu.memory_space<vmem>>, vector<1x128x128xf32>
    %109 = vector.shape_cast %108 : vector<1x128x128xf32> to vector<128x128xf32>
    %cst_78 = arith.constant dense<0.000000e+00> : vector<46x128xf32>
    %110 = tpu.matmul %107, %109, %cst_78 {dimension_numbers = #tpu.dot_dimension_numbers<[1], [0], [0], [1], [0, 0, 1, 1], [], []>} : vector<46x128xf32>, vector<128x128xf32>, vector<46x128xf32> -> vector<46x128xf32>
    %111 = arith.addf %106, %110 : vector<46x128xf32>
    %c0_79 = arith.constant 0 : index
    %c0_80 = arith.constant 0 : index
    %112 = vector.load %arg7[%c0_79, %c0_80] : memref<1x128xf32, #tpu.memory_space<vmem>>, vector<1x128xf32>
    %113 = vector.broadcast %112 : vector<1x128xf32> to vector<46x128xf32>
    %114 = arith.addf %111, %113 : vector<46x128xf32>
    %115 = vector.extract_strided_slice %114 {offsets = [0, 0], sizes = [16, 128], strides = [1, 1]} : vector<46x128xf32> to vector<16x128xf32>
    %116 = vector.extract_strided_slice %114 {offsets = [24, 0], sizes = [16, 128], strides = [1, 1]} : vector<46x128xf32> to vector<16x128xf32>
    %cst_81 = arith.constant dense<0.000000e+00> : vector<128xf32>
    %117 = vector.multi_reduction <add>, %115, %cst_81 [0] : vector<16x128xf32> to vector<128xf32>
    %118 = vector.shape_cast %117 : vector<128xf32> to vector<1x128xf32>
    %cst_82 = arith.constant dense<0.000000e+00> : vector<128xf32>
    %119 = vector.multi_reduction <add>, %116, %cst_82 [0] : vector<16x128xf32> to vector<128xf32>
    %120 = vector.shape_cast %119 : vector<128xf32> to vector<1x128xf32>
    %121 = tpu.concatenate %118, %120 in 0 : vector<1x128xf32>, vector<1x128xf32> -> vector<2x128xf32>
    %122 = arith.mulf %115, %115 : vector<16x128xf32>
    %cst_83 = arith.constant dense<0.000000e+00> : vector<128xf32>
    %123 = vector.multi_reduction <add>, %122, %cst_83 [0] : vector<16x128xf32> to vector<128xf32>
    %124 = vector.shape_cast %123 : vector<128xf32> to vector<1x128xf32>
    %125 = arith.mulf %116, %116 : vector<16x128xf32>
    %cst_84 = arith.constant dense<0.000000e+00> : vector<128xf32>
    %126 = vector.multi_reduction <add>, %125, %cst_84 [0] : vector<16x128xf32> to vector<128xf32>
    %127 = vector.shape_cast %126 : vector<128xf32> to vector<1x128xf32>
    %128 = tpu.concatenate %124, %127 in 0 : vector<1x128xf32>, vector<1x128xf32> -> vector<2x128xf32>
    %129 = tpu.concatenate %121, %128 in 0 : vector<2x128xf32>, vector<2x128xf32> -> vector<4x128xf32>
    %c0_85 = arith.constant 0 : index
    %c0_86 = arith.constant 0 : index
    %130 = vector.load %arg10[%c0_85, %c0_86] : memref<128x2xf32, #tpu.memory_space<vmem>>, vector<128x2xf32>
    %cst_87 = arith.constant dense<0.000000e+00> : vector<4x2xf32>
    %131 = tpu.matmul %129, %130, %cst_87 {dimension_numbers = #tpu.dot_dimension_numbers<[1], [0], [0], [1], [0, 0, 1, 1], [], []>} : vector<4x128xf32>, vector<128x2xf32>, vector<4x2xf32> -> vector<4x2xf32>
    %c0_88 = arith.constant 0 : index
    %c0_89 = arith.constant 0 : index
    %132 = vector.load %arg11[%c0_88, %c0_89] : memref<2x128xf32, #tpu.memory_space<vmem>>, vector<2x128xf32>
    %cst_90 = arith.constant dense<0.000000e+00> : vector<4x128xf32>
    %133 = tpu.matmul %131, %132, %cst_90 {dimension_numbers = #tpu.dot_dimension_numbers<[1], [0], [0], [1], [0, 0, 1, 1], [], []>} : vector<4x2xf32>, vector<2x128xf32>, vector<4x128xf32> -> vector<4x128xf32>
    %134 = vector.extract_strided_slice %133 {offsets = [0, 0], sizes = [2, 128], strides = [1, 1]} : vector<4x128xf32> to vector<2x128xf32>
    %135 = vector.extract_strided_slice %133 {offsets = [2, 0], sizes = [2, 128], strides = [1, 1]} : vector<4x128xf32> to vector<2x128xf32>
    %136 = arith.mulf %134, %134 : vector<2x128xf32>
    %137 = arith.subf %135, %136 : vector<2x128xf32>
    %cst_91 = arith.constant 9.99999974E-6 : f32
    %138 = vector.broadcast %cst_91 : f32 to vector<2x128xf32>
    %139 = arith.addf %137, %138 : vector<2x128xf32>
    %140 = math.rsqrt %139 : vector<2x128xf32>
    %c0_92 = arith.constant 0 : index
    %c0_93 = arith.constant 0 : index
    %141 = vector.load %arg8[%c0_92, %c0_93] : memref<1x128xf32, #tpu.memory_space<vmem>>, vector<1x128xf32>
    %142 = vector.broadcast %141 : vector<1x128xf32> to vector<2x128xf32>
    %143 = arith.mulf %140, %142 : vector<2x128xf32>
    %c0_94 = arith.constant 0 : index
    %c0_95 = arith.constant 0 : index
    %144 = vector.load %arg9[%c0_94, %c0_95] : memref<1x128xf32, #tpu.memory_space<vmem>>, vector<1x128xf32>
    %145 = arith.mulf %134, %143 : vector<2x128xf32>
    %146 = vector.broadcast %144 : vector<1x128xf32> to vector<2x128xf32>
    %147 = arith.subf %146, %145 : vector<2x128xf32>
    %148 = vector.extract_strided_slice %143 {offsets = [0, 0], sizes = [1, 128], strides = [1, 1]} : vector<2x128xf32> to vector<1x128xf32>
    %149 = vector.broadcast %148 : vector<1x128xf32> to vector<16x128xf32>
    %150 = arith.mulf %115, %149 : vector<16x128xf32>
    %151 = vector.extract_strided_slice %147 {offsets = [0, 0], sizes = [1, 128], strides = [1, 1]} : vector<2x128xf32> to vector<1x128xf32>
    %152 = vector.broadcast %151 : vector<1x128xf32> to vector<16x128xf32>
    %153 = arith.addf %150, %152 : vector<16x128xf32>
    %cst_96 = arith.constant 0.000000e+00 : f32
    %154 = vector.broadcast %cst_96 : f32 to vector<16x128xf32>
    %155 = arith.cmpf ogt, %153, %154 : vector<16x128xf32>
    %cst_97 = arith.constant 2.000000e-01 : f32
    %156 = vector.broadcast %cst_97 : f32 to vector<16x128xf32>
    %157 = arith.mulf %156, %153 : vector<16x128xf32>
    %158 = arith.select %155, %153, %157 : vector<16x128xi1>, vector<16x128xf32>
    %159 = vector.extract_strided_slice %143 {offsets = [1, 0], sizes = [1, 128], strides = [1, 1]} : vector<2x128xf32> to vector<1x128xf32>
    %160 = vector.broadcast %159 : vector<1x128xf32> to vector<16x128xf32>
    %161 = arith.mulf %116, %160 : vector<16x128xf32>
    %162 = vector.extract_strided_slice %147 {offsets = [1, 0], sizes = [1, 128], strides = [1, 1]} : vector<2x128xf32> to vector<1x128xf32>
    %163 = vector.broadcast %162 : vector<1x128xf32> to vector<16x128xf32>
    %164 = arith.addf %161, %163 : vector<16x128xf32>
    %cst_98 = arith.constant 0.000000e+00 : f32
    %165 = vector.broadcast %cst_98 : f32 to vector<16x128xf32>
    %166 = arith.cmpf ogt, %164, %165 : vector<16x128xf32>
    %cst_99 = arith.constant 2.000000e-01 : f32
    %167 = vector.broadcast %cst_99 : f32 to vector<16x128xf32>
    %168 = arith.mulf %167, %164 : vector<16x128xf32>
    %169 = arith.select %166, %164, %168 : vector<16x128xi1>, vector<16x128xf32>
    %c0_100 = arith.constant 0 : index
    %c0_101 = arith.constant 0 : index
    %c0_102 = arith.constant 0 : index
    %170 = vector.load %arg12[%c0_100, %c0_101, %c0_102] : memref<2x16x128xf32, #tpu.memory_space<vmem>>, vector<1x16x128xf32>
    %171 = vector.shape_cast %170 : vector<1x16x128xf32> to vector<16x128xf32>
    %172 = vector.shape_cast %158 : vector<16x128xf32> to vector<1x16x128xf32>
    tpu.vector_store %arg12[%c0_100, %c0_101, %c0_102], %172 {strides = array<i32>} : memref<2x16x128xf32, #tpu.memory_space<vmem>>, vector<1x16x128xf32>,
    %c1_103 = arith.constant 1 : index
    %c0_104 = arith.constant 0 : index
    %c0_105 = arith.constant 0 : index
    %173 = vector.load %arg12[%c1_103, %c0_104, %c0_105] : memref<2x16x128xf32, #tpu.memory_space<vmem>>, vector<1x16x128xf32>
    %174 = vector.shape_cast %173 : vector<1x16x128xf32> to vector<16x128xf32>
    %175 = vector.shape_cast %169 : vector<16x128xf32> to vector<1x16x128xf32>
    tpu.vector_store %arg12[%c1_103, %c0_104, %c0_105], %175 {strides = array<i32>} : memref<2x16x128xf32, #tpu.memory_space<vmem>>, vector<1x16x128xf32>,
    return
  }
  func.func @transform_0(%arg0: i32) -> (i32, i32, i32) {
    %c0_i32 = arith.constant 0 : i32
    %c0_i32_0 = arith.constant 0 : i32
    %c0_i32_1 = arith.constant 0 : i32
    return %arg0, %c0_i32, %c0_i32_0 : i32, i32, i32
  }
  func.func @transform_1(%arg0: i32) -> (i32, i32, i32) {
    %c0_i32 = arith.constant 0 : i32
    %c0_i32_0 = arith.constant 0 : i32
    %c0_i32_1 = arith.constant 0 : i32
    %c0_i32_2 = arith.constant 0 : i32
    return %c0_i32, %c0_i32_0, %c0_i32_1 : i32, i32, i32
  }
  func.func @transform_2(%arg0: i32) -> (i32, i32, i32) {
    %c0_i32 = arith.constant 0 : i32
    %c0_i32_0 = arith.constant 0 : i32
    %c0_i32_1 = arith.constant 0 : i32
    %c0_i32_2 = arith.constant 0 : i32
    return %c0_i32, %c0_i32_0, %c0_i32_1 : i32, i32, i32
  }
  func.func @transform_3(%arg0: i32) -> (i32, i32) {
    %c0_i32 = arith.constant 0 : i32
    %c0_i32_0 = arith.constant 0 : i32
    %c0_i32_1 = arith.constant 0 : i32
    return %c0_i32, %c0_i32_0 : i32, i32
  }
  func.func @transform_4(%arg0: i32) -> (i32, i32) {
    %c0_i32 = arith.constant 0 : i32
    %c0_i32_0 = arith.constant 0 : i32
    %c0_i32_1 = arith.constant 0 : i32
    return %c0_i32, %c0_i32_0 : i32, i32
  }
  func.func @transform_5(%arg0: i32) -> (i32, i32) {
    %c0_i32 = arith.constant 0 : i32
    %c0_i32_0 = arith.constant 0 : i32
    %c0_i32_1 = arith.constant 0 : i32
    return %c0_i32, %c0_i32_0 : i32, i32
  }
  func.func @transform_6(%arg0: i32) -> (i32, i32) {
    %c0_i32 = arith.constant 0 : i32
    %c0_i32_0 = arith.constant 0 : i32
    %c0_i32_1 = arith.constant 0 : i32
    return %c0_i32, %c0_i32_0 : i32, i32
  }
  func.func @transform_7(%arg0: i32) -> (i32, i32) {
    %c0_i32 = arith.constant 0 : i32
    %c0_i32_0 = arith.constant 0 : i32
    %c0_i32_1 = arith.constant 0 : i32
    return %c0_i32, %c0_i32_0 : i32, i32
  }
  func.func @transform_8(%arg0: i32) -> (i32, i32) {
    %c0_i32 = arith.constant 0 : i32
    %c0_i32_0 = arith.constant 0 : i32
    %c0_i32_1 = arith.constant 0 : i32
    return %c0_i32, %c0_i32_0 : i32, i32
  }
  func.func @transform_9(%arg0: i32) -> (i32, i32) {
    %c0_i32 = arith.constant 0 : i32
    %c0_i32_0 = arith.constant 0 : i32
    %c0_i32_1 = arith.constant 0 : i32
    return %c0_i32, %c0_i32_0 : i32, i32
  }
  func.func @transform_10(%arg0: i32) -> (i32, i32) {
    %c0_i32 = arith.constant 0 : i32
    %c0_i32_0 = arith.constant 0 : i32
    %c0_i32_1 = arith.constant 0 : i32
    return %c0_i32, %c0_i32_0 : i32, i32
  }
  func.func @transform_11(%arg0: i32) -> (i32, i32, i32) {
    %c0_i32 = arith.constant 0 : i32
    %c0_i32_0 = arith.constant 0 : i32
    %c0_i32_1 = arith.constant 0 : i32
    return %arg0, %c0_i32, %c0_i32_0 : i32, i32, i32
  }
}

</mosaic_0001>

<bundles_post_ra>
// kernel: tpu_custom_call.1
= control target key start
LH: loop header
LB: loop body
LE: loop exit
PB: predicated region body
PF: predicated region fallthrough
CT: control target
= control target key end

     0   :  { %16 = vsyncpa [#allocation5], 0  ;;  %s1307_s0 = inlined_call_operand.vmem [shape: f32[2,16,64], index: 0, kind: input, shape index: {}]   ;;  %s1308_s1 = inlined_call_operand.hbm [shape: f32[3,64,128], index: 1, kind: input, shape index: {}]   ;;  %s1309_s2 = inlined_call_operand.hbm [shape: f32[3,128,128], index: 2, kind: input, shape index: {}]   ;;  %s1310_s3 = inlined_call_operand.vmem [shape: f32[1,128], index: 3, kind: input, shape index: {}]   ;;  %s1311_s4 = inlined_call_operand.vmem [shape: f32[1,128], index: 4, kind: input, shape index: {}]   ;;  %s1312_s5 = inlined_call_operand.vmem [shape: f32[1,128], index: 5, kind: input, shape index: {}]   ;;  %s1313_s6 = inlined_call_operand.vmem [shape: f32[1,128], index: 6, kind: input, shape index: {}]   ;;  %s1314_s7 = inlined_call_operand.vmem [shape: f32[1,128], index: 7, kind: input, shape index: {}]   ;;  %s1315_s8 = inlined_call_operand.vmem [shape: f32[1,128], index: 8, kind: input, shape index: {}]   ;;  %s1316_s9 = inlined_call_operand.vmem [shape: f32[128,2], index: 9, kind: input, shape index: {}]   ;;  %s1317_s10 = inlined_call_operand.vmem [shape: f32[2,128], index: 10, kind: input, shape index: {}]   ;;  %s1318_s11 = inlined_call_operand.hbm [shape: f32[2,16,128], index: 11, kind: output, shape index: {}]  }
   0x1   :  { %17 = vsyncpa [#allocation8], 0 }
   0x2   :  { %18 = vsyncpa [#allocation6], 0  ;;  %s25_s19 = sshll.u32 %s1308_s1, 4  ;;  %s975_s20 = smov [#allocation4]   ;;  %s26_s19 = int_to_ptr.hbm [resolvable:$true] %s25_s19 }
   0x3   :  { %s27_s21 = sshll.u32 %s975_s20, 4  ;;  %s38_s24 = sshll.u32 %s1309_s2, 4  ;;  %s28_s21 = int_to_ptr.vmem [resolvable:$true] %s27_s21  ;;  %s39_s24 = int_to_ptr.hbm [resolvable:$true] %s38_s24 }
   0x4   :  { %s976_s25 = smov 128   ;;  %s977_s26 = smov 8  }
   0x5   :  { %33 = dma.hbm_to_vmem [thread:$0]  %s26_s19, 3072, %s28_s21, [#allocation5], %s976_s25, %s976_s25, %s977_s26  }
   0x6   :  { %s978_s27 = smov [#allocation7]  }
   0x7   :  { %s40_s28 = sshll.u32 %s978_s27, 4  ;;  %s41_s28 = int_to_ptr.vmem [resolvable:$true] %s40_s28 }
   0x8   :  { %46 = dma.hbm_to_vmem [thread:$0]  %s39_s24, 6144, %s41_s28, [#allocation8], %s976_s25, %s976_s25, %s977_s26  }
   0x9   :  { %969 = dma.done.wait [#allocation5], 3072  }
   0xa   :  { %970 = vsyncadd [#allocation5], 4294964224 }
   0xb   :  { %971 = dma.done.wait [#allocation8], 6144  }
   0xc   :  { %972 = vsyncadd [#allocation8], 4294961152  ;;  %vm71_vm0 = vcmask 516096   ;;  %v979_v0 = vmov 0.0   ;;  %vm73_vm1 = vcmask 522240   ;;  %v230_v1 = vld [vmem:[#allocation4 + $0xb8] sm:$0xff] }
   0xd   :  { %72 = vst.msk [vmem:[#allocation2] sm:$0x1] %vm71_vm0, %v979_v0  ;;  %v229_v2 = vld [vmem:[#allocation4 + $0xb0] sm:$0xff]  ;;  %v113_v3 = vld [vmem:[#allocation4 + $0x78] sm:$0xff]  ;;  %263 = vmatpush.msra.mxu2 %v230_v1  ;;  %v228_v6 = vld [vmem:[#allocation4 + $0xa8] sm:$0xff]  ;;  %vm79_vm2 = vcmask 523264  }
   0xe   :  { %75 = vst [vmem:[#allocation3] sm:$0x1] %v979_v0  ;;  %152 = vmatpush.msra.mxu0 %v113_v3  ;;  %v104_v4 = vld [vmem:[#allocation4 + $0x38] sm:$0xff]  ;;  %v112_v5 = vld [vmem:[#allocation4 + $0x70] sm:$0xff]  ;;  %v111_v8 = vld [vmem:[#allocation4 + $0x68] sm:$0xff]  ;;  %873 = vmatpush.msra.mxu3 %v113_v3  ;;  %vm231_vm3 = vcmask 1045504  }
   0xf   :  { %76 = vst [vmem:[#allocation3 + $0x11] sm:$0x7f] %v979_v0  ;;  %197 = vmatpush.msra.mxu1 %v104_v4  ;;  %v103_v7 = vld [vmem:[#allocation4 + $0x30] sm:$0xff]  ;;  %264 = vmatpush.msra.mxu2 %v229_v2  ;;  %v102_v9 = vld [vmem:[#allocation4 + $0x28] sm:$0xff]  ;;  %v227_v10 = vld [vmem:[#allocation4 + $0xa0] sm:$0xff]  ;;  %vm120_vm4 = vcmask 1046528  }
  0x10   :  { %82 = vst.msk [vmem:[#allocation2 + $0x18] sm:$0x1] %vm71_vm0, %v979_v0  ;;  %153 = vmatpush.msra.mxu0 %v112_v5  ;;  %v110_v11 = vld [vmem:[#allocation4 + $0x60] sm:$0xff]  ;;  %874 = vmatpush.msra.mxu3 %v112_v5  ;;  %v226_v13 = vld [vmem:[#allocation4 + $0x98] sm:$0xff]  ;;  %v225_v16 = vld [vmem:[#allocation4 + $0x90] sm:$0xff]  ;;  %vm338_vm5 = vcmask 1041408  }
  0x11   :  { %84 = vst [vmem:[#allocation3 + $0x18] sm:$0x1] %v979_v0  ;;  %198 = vmatpush.msra.mxu1 %v103_v7  ;;  %265 = vmatpush.msra.mxu2 %v228_v6  ;;  %v101_v12 = vld [vmem:[#allocation4 + $0x20] sm:$0xff]  ;;  %v109_v14 = vld [vmem:[#allocation4 + $0x58] sm:$0xff]  ;;  %v78_v18 = vld [vmem:[%s1307_s0 + $0x8] sm:$0xff]  ;;  %vm314_vm6 = vcmask 1040384  }
  0x12   :  { %85 = vst [vmem:[#allocation3 + $0x29] sm:$0x7f] %v979_v0  ;;  %154 = vmatpush.msra.mxu0 %v111_v8  ;;  %v77_v15 = vld [vmem:[%s1307_s0] sm:$0xff]  ;;  %875 = vmatpush.msra.mxu3 %v111_v8  ;;  %v100_v17 = vld [vmem:[#allocation4 + $0x18] sm:$0xff]  ;;  %v224_v19 = vld [vmem:[#allocation4 + $0x88] sm:$0xff]  ;;  %vm377_vm7 = vcmask 15360  }
  0x13   :  { %74 = vst.msk [vmem:[#allocation2 + $0x11] sm:$0x7f] %vm73_vm1, %v979_v0  ;;  %199 = vmatpush.msra.mxu1 %v102_v9  ;;  %266 = vmatpush.msra.mxu2 %v227_v10  ;;  %v108_v20 = vld [vmem:[#allocation4 + $0x50] sm:$0xff]  ;;  %v850_v23 = vld [vmem:[%s1307_s0 + $0x18] sm:$0xff]  ;;  %v107_v24 = vld [vmem:[#allocation4 + $0x48] sm:$0xff]  ;;  %s835_s19 = sshll.u32 %s1318_s11, 4  ;;  %s836_s19 = int_to_ptr.hbm [resolvable:$true] %s835_s19 }
  0x14   :  { %83 = vst.msk [vmem:[#allocation2 + $0x29] sm:$0x7f] %vm73_vm1, %v979_v0  ;;  %155 = vmatpush.msra.mxu0 %v110_v11  ;;  %v99_v21 = vld [vmem:[#allocation4 + $0x10] sm:$0xff]  ;;  %876 = vmatpush.msra.mxu3 %v110_v11  ;;  %v98_v25 = vld [vmem:[#allocation4 + $0x8] sm:$0xff]  ;;  %v223_v26 = vld [vmem:[#allocation4 + $0x80] sm:$0xff] }
  0x15   :  { %80 = vst.msk [vmem:[#allocation2 + $0x1] sm:$0xff] %vm79_vm2, %v77_v15  ;;  %200 = vmatpush.msra.mxu1 %v101_v12  ;;  %v849_v22 = vld [vmem:[%s1307_s0 + $0x10] sm:$0xff]  ;;  %267 = vmatpush.msra.mxu2 %v226_v13  ;;  %v106_v27 = vld [vmem:[#allocation4 + $0x40] sm:$0xff]  ;;  %v1100_v58 = vld [vmem:[%s1316_s9 + $0x78] sm:$0xff] }
  0x16   :  { %81 = vst.msk [vmem:[#allocation2 + $0x9] sm:$0xff] %vm79_vm2, %v78_v18  ;;  %156 = vmatpush.msra.mxu0 %v109_v14  ;;  %877 = vmatpush.msra.mxu3 %v109_v14  ;;  %v97_v28 = vld [vmem:[#allocation4] sm:$0xff]  ;;  %v1106_v60 = vld [vmem:[%s1316_s9 + $0x70] sm:$0xff]  ;;  %v1112_v61 = vld [vmem:[%s1316_s9 + $0x68] sm:$0xff] }
  0x17   :  { %89 = vst.msk [vmem:[#allocation2 + $0x19] sm:$0xff] %vm79_vm2, %v849_v22  ;;  %201 = vmatpush.msra.mxu1 %v100_v17  ;;  %268 = vmatpush.msra.mxu2 %v225_v16  ;;  %v1118_v62 = vld [vmem:[%s1316_s9 + $0x60] sm:$0xff]  ;;  %v1124_v1 = vld [vmem:[%s1316_s9 + $0x58] sm:$0xff]  ;;  %v1130_v3 = vld [vmem:[%s1316_s9 + $0x50] sm:$0xff] }
  0x18   :  { %90 = vst.msk [vmem:[#allocation2 + $0x21] sm:$0xff] %vm79_vm2, %v850_v23  ;;  %157 = vmatpush.msra.mxu0 %v108_v20  ;;  %878 = vmatpush.msra.mxu3 %v108_v20  ;;  %v1136_v5 = vld [vmem:[%s1316_s9 + $0x48] sm:$0xff]  ;;  %v1142_v6 = vld [vmem:[%s1316_s9 + $0x40] sm:$0xff]  ;;  %v1148_v9 = vld [vmem:[%s1316_s9 + $0x38] sm:$0xff] }
  0x19   :  { %202 = vmatpush.msra.mxu1 %v99_v21  ;;  %269 = vmatpush.msra.mxu2 %v224_v19  ;;  %v1154_v12 = vld [vmem:[%s1316_s9 + $0x30] sm:$0xff]  ;;  %v1160_v15 = vld [vmem:[%s1316_s9 + $0x28] sm:$0xff]  ;;  %v1165_v16 = vld [vmem:[%s1316_s9 + $0x20] sm:$0xff] }
  0x1a   :  { %158 = vmatpush.msra.mxu0 %v107_v24  ;;  %879 = vmatpush.msra.mxu3 %v107_v24  ;;  %v1171_v18 = vld [vmem:[%s1316_s9 + $0x18] sm:$0xff]  ;;  %v887_v22 = vld [vmem:[%s1310_s3] ss:$0 sm:$0xff]  ;;  %v1180_v23 = vld [vmem:[%s1316_s9 + $0x10] sm:$0xff] }
  0x1b   :  { %203 = vmatpush.msra.mxu1 %v98_v25  ;;  %270 = vmatpush.msra.mxu2 %v223_v26  ;;  %v1188_v25 = vld [vmem:[%s1316_s9 + $0x8] sm:$0xff] }
  0x1c   :  { %v91_v29 = vld [vmem:[#allocation2] sm:$0xff]  ;;  %159 = vmatpush.msra.mxu0 %v106_v27  ;;  %880 = vmatpush.msra.mxu3 %v106_v27 }
  0x1d   :  { %v92_v30 = vld [vmem:[#allocation2 + $0x8] sm:$0xff]  ;;  %v232_v31 = vrot.slane %v91_v29, 2  ;;  %v121_v32 = vrot.slane %v91_v29, 1  ;;  %204 = vmatpush.msra.mxu1 %v97_v28  ;;  %v93_v35 = vld [vmem:[#allocation2 + $0x10] sm:$0xff]  ;;  %v1196_v27 = vld [vmem:[%s1316_s9] sm:$0xff] }
  0x1e   :  { %v233_v33 = vrot.slane %v92_v30, 2  ;;  %v122_v34 = vrot.slane %v92_v30, 1  ;;  %857 = vmatmul.msk.f32.vlgmr.msra.gmra.mxu1 %vm79_vm2, %v91_v29  ;;  %v235_v40 = vrot.slane %v93_v35, 2  ;;  %v124_v41 = vrot.slane %v93_v35, 1  ;;  %v94_v47 = vld [vmem:[#allocation2 + $0x18] sm:$0xff]  ;;  %356 = vmatpush.msrb.mxu3 %v1100_v58 }
  0x1f   :  { %v96_v36 = vld [vmem:[#allocation2 + $0x28] sm:$0xff]  ;;  %v95_v39 = vld [vmem:[#allocation2 + $0x20] sm:$0xff]  ;;  %v237_v48 = vrot.slane %v94_v47, 2  ;;  %v126_v49 = vrot.slane %v94_v47, 1 }
  0x20   :  { %v234_v37 = vsel %vm231_vm3, %v232_v31, %v233_v33  ;;  %v123_v38 = vsel %vm120_vm4, %v121_v32, %v122_v34  ;;  %v128_v42 = vrot.slane %v95_v39, 1  ;;  %v130_v43 = vrot.slane %v96_v36, 1  ;;  %357 = vmatpush.msrb.mxu3 %v1106_v60 }
  0x21   :  { %863 = vmatmul.msk.f32.vlgmr.msra.gmra.mxu2 %vm79_vm2, %v234_v37  ;;  %851 = vmatmul.msk.f32.vlgmr.msra.gmra.mxu0 %vm79_vm2, %v123_v38  ;;  %v236_v45 = vsel %vm231_vm3, %v233_v33, %v235_v40  ;;  %v125_v46 = vsel %vm120_vm4, %v122_v34, %v124_v41  ;;  %v238_v50 = vsel %vm231_vm3, %v235_v40, %v237_v48  ;;  %v239_v52 = vrot.slane %v95_v39, 2  ;;  %v376_v34 = vld [vmem:[%s1317_s10] sm:$0x3] }
  0x22   :  { %v131_v44 = vsel %vm120_vm4, %v128_v42, %v130_v43  ;;  %v127_v51 = vsel %vm120_vm4, %v124_v41, %v126_v49  ;;  %v129_v54 = vsel %vm120_vm4, %v126_v49, %v128_v42  ;;  %v241_v55 = vrot.slane %v96_v36, 2  ;;  %358 = vmatpush.msrb.mxu3 %v1112_v61 }
  0x23   :  { %855 = vmatmul.msk.f32.vlgmr.msra.gmra.mxu3 %vm79_vm2, %v131_v44  ;;  %v240_v53 = vsel %vm231_vm3, %v237_v48, %v239_v52 }
  0x24   :  { %v242_v56 = vsel %vm231_vm3, %v239_v52, %v241_v55  ;;  %359 = vmatpush.msrb.mxu3 %v1118_v62 }
  0x26   :  { %858 = vmatmul.msk.f32.gmra.mxu1 %vm79_vm2, %v92_v30  ;;  %360 = vmatpush.msrb.mxu3 %v1124_v1 }
  0x28   :  { %361 = vmatpush.msrb.mxu3 %v1130_v3 }
  0x29   :  { %864 = vmatmul.msk.f32.gmra.mxu2 %vm79_vm2, %v236_v45  ;;  %852 = vmatmul.msk.f32.gmra.mxu0 %vm79_vm2, %v125_v46 }
  0x2a   :  { %362 = vmatpush.msrb.mxu3 %v1136_v5 }
  0x2b   :  { %856 = vmatmul.msk.f32.gmra.mxu3 %vm79_vm2, %v130_v43 }
  0x2c   :  { %363 = vmatpush.msrb.mxu3 %v1142_v6 }
  0x2e   :  { %859 = vmatmul.msk.f32.gmra.mxu1 %vm79_vm2, %v93_v35  ;;  %364 = vmatpush.msrb.mxu3 %v1148_v9 }
  0x30   :  { %365 = vmatpush.msrb.mxu3 %v1154_v12 }
  0x31   :  { %865 = vmatmul.msk.f32.gmra.mxu2 %vm79_vm2, %v238_v50  ;;  %853 = vmatmul.msk.f32.gmra.mxu0 %vm79_vm2, %v127_v51 }
  0x32   :  { %366 = vmatpush.msrb.mxu3 %v1160_v15 }
  0x34   :  { %367 = vmatpush.msrb.mxu3 %v1165_v16 }
  0x36   :  { %860 = vmatmul.msk.f32.gmra.mxu1 %vm79_vm2, %v94_v47  ;;  %368 = vmatpush.msrb.mxu3 %v1171_v18 }
  0x38   :  { %369 = vmatpush.msrb.mxu3 %v1180_v23 }
  0x39   :  { %866 = vmatmul.msk.f32.gmra.mxu2 %vm79_vm2, %v240_v53  ;;  %854 = vmatmul.msk.f32.gmra.mxu0 %vm79_vm2, %v129_v54 }
  0x3a   :  { %370 = vmatpush.msrb.mxu3 %v1188_v25 }
  0x3c   :  { %371 = vmatpush.msrb.mxu3 %v1196_v27 }
  0x3e   :  { %861 = vmatmul.msk.f32.gmra.mxu1 %vm79_vm2, %v95_v39  ;;  %869 = vmatpush.msk.msra.mxu3 %vm338_vm5, %v376_v34  ;;  %v477_v34 = vld [vmem:[#allocation7 + $0x48] sm:$0xff] }
  0x41   :  { %867 = vmatmul.msk.f32.gmra.mxu2 %vm79_vm2, %v242_v56 }
  0x46   :  { %862 = vmatmul.msk.f32.gmra.mxu1 %vm79_vm2, %v96_v36 }
  0x49   :  { %868 = vmatmul.msk.f32.gmra.mxu2 %vm79_vm2, %v241_v55 }
  0x9b   :  { %v206_v57 = vpop.f32.mrf.mxu1 }
  0x9e   :  { %v161_v59 = vpop.f32.mrf.mxu0 }
  0x9f   :  { %v207_v14 = vadd.f32 %v206_v57, %v161_v59 }
  0xa3   :  { %v209_v0 = vpop.f32.mrf.mxu1 }
  0xa4   :  { %v272_v63 = vpop.f32.mrf.mxu2 }
  0xa5   :  { %v288_v21 = vadd.f32 %v272_v63, %v207_v14 }
  0xa6   :  { %v164_v2 = vpop.f32.mrf.mxu0  ;;  %v172_v4 = vpop.f32.mrf.mxu3 }
  0xa7   :  { %v210_v11 = vadd.f32 %v209_v0, %v164_v2  ;;  %v1191_v26 = vadd.f32 %v887_v22, %v288_v21 }
  0xa9   :  { %v316_v32 = vmul.f32 %v1191_v26, %v1191_v26 }
  0xab   :  { %v212_v8 = vpop.f32.mrf.mxu1 }
  0xac   :  { %v275_v7 = vpop.f32.mrf.mxu2 }
  0xad   :  { %v289_v17 = vadd.f32 %v275_v7, %v210_v11 }
  0xae   :  { %v167_v10 = vpop.f32.mrf.mxu0  ;;  %v175_v13 = vpop.f32.mrf.mxu3 }
  0xaf   :  { %v1183_v24 = vadd.f32 %v887_v22, %v289_v17 }
  0xb1   :  { %v317_v29 = vmul.f32 %v1183_v24, %v1183_v24  ;;  %v300_v36 = vadd.f32 %v1183_v24, %v1191_v26 }
  0xb3   :  { %v214_v20 = vpop.f32.mrf.mxu1  ;;  %v318_v35 = vadd.f32 %v317_v29, %v316_v32  ;;  %v301_v42 = vrot.slane %v300_v36, 4  ;;  %v496_v32 = vld [vmem:[#allocation7 + $0xd8] sm:$0xff] }
  0xb4   :  { %v278_v19 = vpop.f32.mrf.mxu2 }
  0xb5   :  { %v319_v39 = vrot.slane %v318_v35, 4  ;;  %v302_v47 = vadd.f32 %v301_v42, %v300_v36  ;;  %v495_v36 = vld [vmem:[#allocation7 + $0xd0] sm:$0xff]  ;;  %v475_v42 = vld [vmem:[#allocation7 + $0x38] sm:$0xff] }
  0xb6   :  { %v169_v28 = vpop.f32.mrf.mxu0 }
  0xb7   :  { %v215_v33 = vadd.f32 %v214_v20, %v169_v28  ;;  %v320_v45 = vadd.f32 %v319_v39, %v318_v35  ;;  %v303_v55 = vrot.slane %v302_v47, 2  ;;  %v601_v35 = vld [vmem:[#allocation7 + $0x150] sm:$0xff]  ;;  %v600_v39 = vld [vmem:[#allocation7 + $0x148] sm:$0xff] }
  0xb9   :  { %v321_v51 = vrot.slane %v320_v45, 2 }
  0xbb   :  { %v217_v31 = vpop.f32.mrf.mxu1  ;;  %v322_v0 = vadd.f32 %v321_v51, %v320_v45  ;;  %v493_v45 = vld [vmem:[#allocation7 + $0xc0] sm:$0xff]  ;;  %v473_v51 = vld [vmem:[#allocation7 + $0x28] sm:$0xff] }
  0xbc   :  { %v280_v30 = vpop.f32.mrf.mxu2  ;;  %v218_v38 = vadd.f32 %v217_v31, %v172_v4  ;;  %v304_v4 = vadd.f32 %v303_v55, %v302_v47  ;;  %v602_v31 = vld [vmem:[#allocation7 + $0x158] sm:$0xff]  ;;  %v596_v55 = vld [vmem:[#allocation7 + $0x128] sm:$0xff] }
  0xbd   :  { %v290_v37 = vadd.f32 %v280_v30, %v215_v33  ;;  %v323_v10 = vrot.slane %v322_v0, 1 }
  0xbe   :  { %v305_v13 = vrot.slane %v304_v4, 1 }
  0xbf   :  { %v1210_v43 = vadd.f32 %v887_v22, %v290_v37  ;;  %v324_v19 = vadd.f32 %v323_v10, %v322_v0  ;;  %v489_v0 = vld [vmem:[#allocation7 + $0xa0] sm:$0xff] }
  0xc0   :  { %v306_v21 = vadd.f32 %v305_v13, %v304_v4  ;;  %v487_v13 = vld [vmem:[#allocation7 + $0x90] sm:$0xff] }
  0xc1   :  { %v325_v48 = vmul.f32 %v1210_v43, %v1210_v43 }
  0xc3   :  { %v220_v41 = vpop.f32.mrf.mxu1 }
  0xc4   :  { %v283_v40 = vpop.f32.mrf.mxu2 }
  0xc5   :  { %v291_v44 = vadd.f32 %v283_v40, %v218_v38  ;;  %v476_v38 = vld [vmem:[#allocation7 + $0x40] sm:$0xff]  ;;  %v494_v40 = vld [vmem:[#allocation7 + $0xc8] sm:$0xff] }
  0xc7   :  { %v1212_v46 = vadd.f32 %v887_v22, %v291_v44  ;;  %v599_v44 = vld [vmem:[#allocation7 + $0x140] sm:$0xff] }
  0xc9   :  { %v307_v49 = vadd.f32 %v1212_v46, %v1210_v43  ;;  %v326_v50 = vmul.f32 %v1212_v46, %v1212_v46 }
  0xcb   :  { %v308_v52 = vrot.slane %v307_v49, 4  ;;  %v327_v53 = vadd.f32 %v326_v50, %v325_v48  ;;  %v474_v48 = vld [vmem:[#allocation7 + $0x30] sm:$0xff]  ;;  %v492_v50 = vld [vmem:[#allocation7 + $0xb8] sm:$0xff] }
  0xcc   :  { %v286_v54 = vpop.f32.mrf.mxu2 }
  0xcd   :  { %v309_v56 = vadd.f32 %v308_v52, %v307_v49  ;;  %v328_v57 = vrot.slane %v327_v53, 4  ;;  %v598_v49 = vld [vmem:[#allocation7 + $0x138] sm:$0xff]  ;;  %v597_v52 = vld [vmem:[#allocation7 + $0x130] sm:$0xff]  ;;  %v472_v54 = vld [vmem:[#allocation7 + $0x20] sm:$0xff] }
  0xcf   :  { %v310_v59 = vrot.slane %v309_v56, 2  ;;  %v329_v63 = vadd.f32 %v328_v57, %v327_v53  ;;  %v491_v53 = vld [vmem:[#allocation7 + $0xb0] sm:$0xff]  ;;  %v595_v57 = vld [vmem:[#allocation7 + $0x120] sm:$0xff] }
  0xd1   :  { %v330_v2 = vrot.slane %v329_v63, 2  ;;  %v311_v7 = vadd.f32 %v310_v59, %v309_v56  ;;  %v490_v56 = vld [vmem:[#allocation7 + $0xa8] sm:$0xff]  ;;  %v471_v59 = vld [vmem:[#allocation7 + $0x18] sm:$0xff] }
  0xd3   :  { %v312_v8 = vrot.slane %v311_v7, 1  ;;  %v331_v11 = vadd.f32 %v330_v2, %v329_v63  ;;  %v594_v63 = vld [vmem:[#allocation7 + $0x118] sm:$0xff]  ;;  %v470_v2 = vld [vmem:[#allocation7 + $0x10] sm:$0xff] }
  0xd5   :  { %v332_v14 = vrot.slane %v331_v11, 1  ;;  %v313_v17 = vadd.f32 %v312_v8, %v311_v7  ;;  %v488_v7 = vld [vmem:[#allocation7 + $0x98] sm:$0xff]  ;;  %v469_v8 = vld [vmem:[#allocation7 + $0x8] sm:$0xff] }
  0xd7   :  { %v333_v20 = vadd.f32 %v332_v14, %v331_v11  ;;  %v315_v29 = vsel %vm314_vm6, %v306_v21, %v313_v17  ;;  %v593_v11 = vld [vmem:[#allocation7 + $0x110] sm:$0xff]  ;;  %v468_v14 = vld [vmem:[#allocation7] sm:$0xff] }
  0xd9   :  { %v334_v22 = vsel %vm314_vm6, %v324_v19, %v333_v20  ;;  %v592_v19 = vld [vmem:[#allocation7 + $0x108] sm:$0xff] }
  0xda   :  { %v336_v28 = vrot.slane %v334_v22, 6  ;;  %v486_v20 = vld [vmem:[#allocation7 + $0x88] sm:$0xff]  ;;  %v591_v22 = vld [vmem:[#allocation7 + $0x100] sm:$0xff] }
  0xdc   :  { %v339_v30 = vsel %vm338_vm5, %v315_v29, %v336_v28  ;;  %v485_v28 = vld [vmem:[#allocation7 + $0x80] sm:$0xff] }
  0xdd   :  { %372 = vmatmul.f32.vlgmr.msrb.gmra.mxu3 %v339_v30  ;;  %v888_v30 = vld [vmem:[%s1311_s4] ss:$0 sm:$0xff] }
  0xde   :  { %723 = vmatpush.msrb.mxu3 %v1100_v58 }
  0xe0   :  { %724 = vmatpush.msrb.mxu3 %v1106_v60  ;;  %v483_v60 = vld [vmem:[#allocation7 + $0x78] sm:$0xff] }
  0xe1   :  { %557 = vmatpush.msrb.mxu1 %v483_v60 }
  0xe2   :  { %725 = vmatpush.msrb.mxu3 %v1112_v61  ;;  %v482_v61 = vld [vmem:[#allocation7 + $0x70] sm:$0xff] }
  0xe3   :  { %558 = vmatpush.msrb.mxu1 %v482_v61 }
  0xe4   :  { %726 = vmatpush.msrb.mxu3 %v1118_v62  ;;  %v606_v62 = vld [vmem:[#allocation7 + $0x178] sm:$0xff] }
  0xe5   :  { %624 = vmatpush.msrb.mxu2 %v606_v62 }
  0xe6   :  { %727 = vmatpush.msrb.mxu3 %v1124_v1  ;;  %v500_v1 = vld [vmem:[#allocation7 + $0xf8] sm:$0xff] }
  0xe7   :  { %524 = vmatpush.msrb.mxu0 %v500_v1  ;;  %v889_v1 = vld [vmem:[%s1312_s5] ss:$0 sm:$0xff] }
  0xe8   :  { %728 = vmatpush.msrb.mxu3 %v1130_v3  ;;  %v481_v3 = vld [vmem:[#allocation7 + $0x68] sm:$0xff] }
  0xe9   :  { %559 = vmatpush.msrb.mxu1 %v481_v3 }
  0xea   :  { %729 = vmatpush.msrb.mxu3 %v1136_v5  ;;  %v605_v5 = vld [vmem:[#allocation7 + $0x170] sm:$0xff] }
  0xeb   :  { %625 = vmatpush.msrb.mxu2 %v605_v5 }
  0xec   :  { %730 = vmatpush.msrb.mxu3 %v1142_v6  ;;  %v499_v6 = vld [vmem:[#allocation7 + $0xf0] sm:$0xff] }
  0xed   :  { %525 = vmatpush.msrb.mxu0 %v499_v6 }
  0xee   :  { %731 = vmatpush.msrb.mxu3 %v1148_v9  ;;  %v480_v9 = vld [vmem:[#allocation7 + $0x60] sm:$0xff] }
  0xef   :  { %560 = vmatpush.msrb.mxu1 %v480_v9 }
  0xf0   :  { %732 = vmatpush.msrb.mxu3 %v1154_v12  ;;  %v604_v12 = vld [vmem:[#allocation7 + $0x168] sm:$0xff] }
  0xf1   :  { %626 = vmatpush.msrb.mxu2 %v604_v12 }
  0xf2   :  { %733 = vmatpush.msrb.mxu3 %v1160_v15  ;;  %v498_v15 = vld [vmem:[#allocation7 + $0xe8] sm:$0xff] }
  0xf3   :  { %526 = vmatpush.msrb.mxu0 %v498_v15 }
  0xf4   :  { %734 = vmatpush.msrb.mxu3 %v1165_v16  ;;  %v479_v16 = vld [vmem:[#allocation7 + $0x58] sm:$0xff] }
  0xf5   :  { %561 = vmatpush.msrb.mxu1 %v479_v16 }
  0xf6   :  { %735 = vmatpush.msrb.mxu3 %v1171_v18  ;;  %v603_v18 = vld [vmem:[#allocation7 + $0x160] sm:$0xff] }
  0xf7   :  { %627 = vmatpush.msrb.mxu2 %v603_v18 }
  0xf8   :  { %736 = vmatpush.msrb.mxu3 %v1180_v23  ;;  %v497_v23 = vld [vmem:[#allocation7 + $0xe0] sm:$0xff] }
  0xf9   :  { %527 = vmatpush.msrb.mxu0 %v497_v23  ;;  %628 = vmatpush.msrb.mxu2 %v602_v31 }
  0xfa   :  { %737 = vmatpush.msrb.mxu3 %v1188_v25  ;;  %v478_v25 = vld [vmem:[#allocation7 + $0x50] sm:$0xff] }
  0xfb   :  { %562 = vmatpush.msrb.mxu1 %v478_v25  ;;  %528 = vmatpush.msrb.mxu0 %v496_v32 }
  0xfc   :  { %738 = vmatpush.msrb.mxu3 %v1196_v27  ;;  %629 = vmatpush.msrb.mxu2 %v601_v35 }
  0xfd   :  { %563 = vmatpush.msrb.mxu1 %v477_v34  ;;  %529 = vmatpush.msrb.mxu0 %v495_v36 }
  0xfe   :  { %630 = vmatpush.msrb.mxu2 %v600_v39 }
  0xff   :  { %564 = vmatpush.msrb.mxu1 %v476_v38  ;;  %530 = vmatpush.msrb.mxu0 %v494_v40 }
 0x100   :  { %631 = vmatpush.msrb.mxu2 %v599_v44 }
 0x101   :  { %565 = vmatpush.msrb.mxu1 %v475_v42  ;;  %531 = vmatpush.msrb.mxu0 %v493_v45 }
 0x102   :  { %632 = vmatpush.msrb.mxu2 %v598_v49 }
 0x103   :  { %566 = vmatpush.msrb.mxu1 %v474_v48  ;;  %532 = vmatpush.msrb.mxu0 %v492_v50 }
 0x104   :  { %633 = vmatpush.msrb.mxu2 %v597_v52 }
 0x105   :  { %567 = vmatpush.msrb.mxu1 %v473_v51  ;;  %533 = vmatpush.msrb.mxu0 %v491_v53 }
 0x106   :  { %634 = vmatpush.msrb.mxu2 %v596_v55 }
 0x107   :  { %568 = vmatpush.msrb.mxu1 %v472_v54  ;;  %534 = vmatpush.msrb.mxu0 %v490_v56 }
 0x108   :  { %635 = vmatpush.msrb.mxu2 %v595_v57 }
 0x109   :  { %569 = vmatpush.msrb.mxu1 %v471_v59  ;;  %535 = vmatpush.msrb.mxu0 %v489_v0 }
 0x10a   :  { %636 = vmatpush.msrb.mxu2 %v594_v63 }
 0x10b   :  { %570 = vmatpush.msrb.mxu1 %v470_v2  ;;  %536 = vmatpush.msrb.mxu0 %v488_v7 }
 0x10c   :  { %637 = vmatpush.msrb.mxu2 %v593_v11 }
 0x10d   :  { %571 = vmatpush.msrb.mxu1 %v469_v8  ;;  %537 = vmatpush.msrb.mxu0 %v487_v13 }
 0x10e   :  { %638 = vmatpush.msrb.mxu2 %v592_v19 }
 0x10f   :  { %572 = vmatpush.msrb.mxu1 %v468_v14  ;;  %538 = vmatpush.msrb.mxu0 %v486_v20 }
 0x110   :  { %639 = vmatpush.msrb.mxu2 %v591_v22 }
 0x111   :  { %539 = vmatpush.msrb.mxu0 %v485_v28 }
 0x160   :  { %v373_v58 = vpop.f32.mrf.mxu3 }
 0x161   :  { %870 = vmatmul.msk.f32.vlgmr.msra.gmra.mxu3 %vm377_vm7, %v373_v58 }
 0x1e4   :  { %v1240_v27 = vpop.f32.mrf.mxu3 }
 0x1e5   :  { %v404_v33 = vmul.f32 %v1240_v27, %v1240_v27 }
 0x1e7   :  { %v406_v37 = vrot.slane %v404_v33, 6 }
 0x1e9   :  { %v408_v41 = vsub.f32 %v1240_v27, %v406_v37 }
 0x1eb   :  { %v409_v47 = vadd.f32 1e-05, %v408_v41 }
 0x1ed   :  { %893 = vrsqrt.f32 %v409_v47  ;;  %vm416_vm9 = vweird.f32 %v409_v47 }
 0x1f3   :  { %v894_v4 = vpop.eup %893 }
 0x1f4   :  { %v411_v10 = vmul.f32 %v894_v4, %v409_v47  ;;  %vm417_vm8 = vweird.f32 %v894_v4 }
 0x1f5   :  { %vm418_vm10 = vmor %vm416_vm9, %vm417_vm8 }
 0x1f6   :  { %v412_v17 = vmul.f32 %v894_v4, %v411_v10 }
 0x1f8   :  { %v413_v21 = vmul.f32 0.5, %v412_v17 }
 0x1fa   :  { %v414_v29 = vsub.f32 1.5, %v413_v21 }
 0x1fc   :  { %v415_v58 = vmul.f32 %v894_v4, %v414_v29 }
 0x1fe   :  { %v419_v60 = vsel %vm418_vm10, %v894_v4, %v415_v58 }
 0x1ff   :  { %v424_v61 = vmul.f32 %v888_v30, %v419_v60 }
 0x201   :  { %v427_v62 = vrot.slane %v424_v61, 2  ;;  %v434_v3 = vperm.slane %v424_v61, 2  ;;  %v446_v6 = vperm.slane %v424_v61, 3 }
 0x203   :  { %v429_v5 = vmul.f32 %v427_v62, %v1240_v27  ;;  %v435_v12 = vmul.f32 %v434_v3, %v1191_v26  ;;  %v436_v15 = vmul.f32 %v434_v3, %v1183_v24  ;;  %v447_v18 = vmul.f32 %v446_v6, %v1210_v43  ;;  %v890_v3 = vld [vmem:[%s1313_s6] ss:$0 sm:$0xff] }
 0x204   :  { %v448_v23 = vmul.f32 %v446_v6, %v1212_v46 }
 0x205   :  { %v433_v9 = vsub.f32 %v889_v1, %v429_v5 }
 0x207   :  { %v437_v16 = vperm.slane %v433_v9, 0  ;;  %v449_v25 = vperm.slane %v433_v9, 1 }
 0x209   :  { %v438_v31 = vadd.f32 %v437_v16, %v435_v12  ;;  %v439_v32 = vadd.f32 %v437_v16, %v436_v15  ;;  %v450_v33 = vadd.f32 %v449_v25, %v447_v18  ;;  %v451_v34 = vadd.f32 %v449_v25, %v448_v23  ;;  %v743_v23 = vld [vmem:[%s1317_s10] sm:$0x3] }
 0x20a   :  { %871 = vmatpush.msk.msra.mxu3 %vm338_vm5, %v743_v23  ;;  %v892_v23 = vld [vmem:[%s1315_s8] ss:$0 sm:$0xff] }
 0x20b   :  { %vm440_vm11 = vcmp.gt.f32.partialorder %v438_v31, 0.0  ;;  %vm441_vm12 = vcmp.gt.f32.partialorder %v439_v32, 0.0  ;;  %v442_v35 = vmul.f32 0.2, %v438_v31  ;;  %v443_v27 = vmul.f32 0.2, %v439_v32 }
 0x20c   :  { %vm452_vm13 = vcmp.gt.f32.partialorder %v450_v33, 0.0  ;;  %vm453_vm14 = vcmp.gt.f32.partialorder %v451_v34, 0.0  ;;  %v454_v36 = vmul.f32 0.2, %v450_v33  ;;  %v455_v26 = vmul.f32 0.2, %v451_v34 }
 0x20d   :  { %v444_v37 = vsel %vm440_vm11, %v438_v31, %v442_v35  ;;  %v445_v24 = vsel %vm441_vm12, %v439_v32, %v443_v27 }
 0x20e   :  { %v456_v38 = vsel %vm452_vm13, %v450_v33, %v454_v36  ;;  %v457_v39 = vsel %vm453_vm14, %v451_v34, %v455_v26  ;;  %458 = vst [vmem:[#allocation3 + $0x1] sm:$0xff] %v444_v37 }
 0x20f   :  { %459 = vst [vmem:[#allocation3 + $0x9] sm:$0xff] %v445_v24 }
 0x210   :  { %460 = vst [vmem:[#allocation3 + $0x19] sm:$0xff] %v456_v38 }
 0x211   :  { %461 = vst [vmem:[#allocation3 + $0x21] sm:$0xff] %v457_v39 }
 0x215   :  { %v462_v43 = vld [vmem:[#allocation3] sm:$0xff] }
 0x216   :  { %v507_v46 = vrot.slane %v462_v43, 1  ;;  %573 = vmatmul.f32.vlgmr.msrb.gmra.mxu1 %v462_v43  ;;  %v607_v40 = vrot.slane %v462_v43, 2  ;;  %v463_v41 = vld [vmem:[#allocation3 + $0x8] sm:$0xff]  ;;  %v464_v48 = vld [vmem:[#allocation3 + $0x10] sm:$0xff] }
 0x217   :  { %v508_v42 = vrot.slane %v463_v41, 1  ;;  %v608_v44 = vrot.slane %v463_v41, 2  ;;  %v510_v49 = vrot.slane %v464_v48, 1  ;;  %v610_v50 = vrot.slane %v464_v48, 2  ;;  %v465_v53 = vld [vmem:[#allocation3 + $0x18] sm:$0xff] }
 0x218   :  { %v512_v54 = vrot.slane %v465_v53, 1  ;;  %v612_v55 = vrot.slane %v465_v53, 2  ;;  %v466_v59 = vld [vmem:[#allocation3 + $0x20] sm:$0xff]  ;;  %v467_v7 = vld [vmem:[#allocation3 + $0x28] sm:$0xff] }
 0x219   :  { %v509_v45 = vsel %vm120_vm4, %v507_v46, %v508_v42  ;;  %v609_v47 = vsel %vm231_vm3, %v607_v40, %v608_v44  ;;  %v511_v51 = vsel %vm120_vm4, %v508_v42, %v510_v49  ;;  %v611_v52 = vsel %vm231_vm3, %v608_v44, %v610_v50 }
 0x21a   :  { %540 = vmatmul.f32.vlgmr.msrb.gmra.mxu0 %v509_v45  ;;  %640 = vmatmul.f32.vlgmr.msrb.gmra.mxu2 %v609_v47  ;;  %v513_v56 = vsel %vm120_vm4, %v510_v49, %v512_v54  ;;  %v613_v57 = vsel %vm231_vm3, %v610_v50, %v612_v55  ;;  %v514_v63 = vrot.slane %v466_v59, 1  ;;  %v614_v0 = vrot.slane %v466_v59, 2 }
 0x21b   :  { %v516_v8 = vrot.slane %v467_v7, 1  ;;  %v616_v10 = vrot.slane %v467_v7, 2 }
 0x21c   :  { %v515_v2 = vsel %vm120_vm4, %v512_v54, %v514_v63  ;;  %v615_v4 = vsel %vm231_vm3, %v612_v55, %v614_v0 }
 0x21d   :  { %v517_v11 = vsel %vm120_vm4, %v514_v63, %v516_v8  ;;  %v617_v13 = vsel %vm231_vm3, %v614_v0, %v616_v10 }
 0x21e   :  { %576 = vmatmul.f32.gmra.mxu1 %v463_v41 }
 0x222   :  { %543 = vmatmul.f32.gmra.mxu0 %v511_v51  ;;  %643 = vmatmul.f32.gmra.mxu2 %v611_v52 }
 0x226   :  { %579 = vmatmul.f32.gmra.mxu1 %v464_v48 }
 0x22a   :  { %546 = vmatmul.f32.gmra.mxu0 %v513_v56  ;;  %646 = vmatmul.f32.gmra.mxu2 %v613_v57 }
 0x22e   :  { %581 = vmatmul.f32.gmra.mxu1 %v465_v53 }
 0x232   :  { %548 = vmatmul.f32.gmra.mxu0 %v515_v2  ;;  %648 = vmatmul.f32.gmra.mxu2 %v615_v4 }
 0x236   :  { %584 = vmatmul.f32.gmra.mxu1 %v466_v59 }
 0x23a   :  { %551 = vmatmul.f32.gmra.mxu0 %v517_v11  ;;  %651 = vmatmul.f32.gmra.mxu2 %v617_v13 }
 0x23e   :  { %587 = vmatmul.f32.gmra.mxu1 %v467_v7 }
 0x242   :  { %554 = vmatmul.f32.gmra.mxu0 %v516_v8  ;;  %654 = vmatmul.f32.gmra.mxu2 %v616_v10 }
 0x293   :  { %v574_v14 = vpop.f32.mrf.mxu1 }
 0x297   :  { %v541_v17 = vpop.f32.mrf.mxu0 }
 0x298   :  { %v575_v60 = vadd.f32 %v574_v14, %v541_v17 }
 0x29b   :  { %v577_v19 = vpop.f32.mrf.mxu1 }
 0x29d   :  { %v641_v20 = vpop.f32.mrf.mxu2 }
 0x29e   :  { %v657_v1 = vadd.f32 %v641_v20, %v575_v60 }
 0x29f   :  { %v544_v21 = vpop.f32.mrf.mxu0 }
 0x2a0   :  { %v578_v30 = vadd.f32 %v577_v19, %v544_v21  ;;  %v1271_v9 = vadd.f32 %v890_v3, %v657_v1 }
 0x2a2   :  { %v684_v18 = vmul.f32 %v1271_v9, %v1271_v9 }
 0x2a3   :  { %v580_v22 = vpop.f32.mrf.mxu1 }
 0x2a5   :  { %v644_v28 = vpop.f32.mrf.mxu2 }
 0x2a6   :  { %v658_v61 = vadd.f32 %v644_v28, %v578_v30 }
 0x2a7   :  { %v547_v29 = vpop.f32.mrf.mxu0 }
 0x2a8   :  { %v1269_v6 = vadd.f32 %v890_v3, %v658_v61 }
 0x2aa   :  { %v685_v15 = vmul.f32 %v1269_v6, %v1269_v6  ;;  %v669_v33 = vadd.f32 %v1269_v6, %v1271_v9 }
 0x2ab   :  { %v582_v58 = vpop.f32.mrf.mxu1 }
 0x2ac   :  { %v686_v31 = vadd.f32 %v685_v15, %v684_v18  ;;  %v670_v37 = vrot.slane %v669_v33, 4 }
 0x2ad   :  { %v647_v62 = vpop.f32.mrf.mxu2 }
 0x2ae   :  { %v687_v27 = vrot.slane %v686_v31, 4  ;;  %v671_v40 = vadd.f32 %v670_v37, %v669_v33 }
 0x2af   :  { %v549_v5 = vpop.f32.mrf.mxu0 }
 0x2b0   :  { %v583_v32 = vadd.f32 %v582_v58, %v549_v5  ;;  %v688_v43 = vadd.f32 %v687_v27, %v686_v31  ;;  %v672_v50 = vrot.slane %v671_v40, 2  ;;  %v891_v5 = vld [vmem:[%s1314_s7] ss:$0 sm:$0xff]  ;;  %s980_s7 = smov [#allocation9]  }
 0x2b1   :  { %s833_s17 = sshll.u32 %s980_s7, 4  ;;  %s834_s17 = int_to_ptr.vmem [resolvable:$true] %s833_s17 }
 0x2b2   :  { %v689_v45 = vrot.slane %v688_v43, 2  ;;  %v673_v56 = vadd.f32 %v672_v50, %v671_v40 }
 0x2b3   :  { %v585_v12 = vpop.f32.mrf.mxu1 }
 0x2b4   :  { %v690_v53 = vadd.f32 %v689_v45, %v688_v43  ;;  %v674_v4 = vrot.slane %v673_v56, 1 }
 0x2b5   :  { %v649_v16 = vpop.f32.mrf.mxu2 }
 0x2b6   :  { %v659_v34 = vadd.f32 %v649_v16, %v583_v32  ;;  %v691_v2 = vrot.slane %v690_v53, 1  ;;  %v675_v13 = vadd.f32 %v674_v4, %v673_v56 }
 0x2b7   :  { %v552_v25 = vpop.f32.mrf.mxu0 }
 0x2b8   :  { %v586_v36 = vadd.f32 %v585_v12, %v552_v25  ;;  %v1283_v24 = vadd.f32 %v890_v3, %v659_v34  ;;  %v692_v10 = vadd.f32 %v691_v2, %v690_v53 }
 0x2ba   :  { %v693_v41 = vmul.f32 %v1283_v24, %v1283_v24 }
 0x2bb   :  { %v588_v35 = vpop.f32.mrf.mxu1 }
 0x2bd   :  { %v652_v26 = vpop.f32.mrf.mxu2 }
 0x2be   :  { %v660_v38 = vadd.f32 %v652_v26, %v586_v36 }
 0x2bf   :  { %v555_v39 = vpop.f32.mrf.mxu0 }
 0x2c0   :  { %v668_v46 = vadd.f32 %v890_v3, %v660_v38 }
 0x2c2   :  { %v676_v42 = vadd.f32 %v668_v46, %v1283_v24  ;;  %v694_v44 = vmul.f32 %v668_v46, %v668_v46 }
 0x2c4   :  { %v677_v47 = vrot.slane %v676_v42, 4  ;;  %v695_v48 = vadd.f32 %v694_v44, %v693_v41 }
 0x2c5   :  { %v655_v49 = vpop.f32.mrf.mxu2 }
 0x2c6   :  { %v678_v51 = vadd.f32 %v677_v47, %v676_v42  ;;  %v696_v52 = vrot.slane %v695_v48, 4 }
 0x2c8   :  { %v679_v54 = vrot.slane %v678_v51, 2  ;;  %v697_v55 = vadd.f32 %v696_v52, %v695_v48 }
 0x2ca   :  { %v680_v57 = vadd.f32 %v679_v54, %v678_v51  ;;  %v698_v59 = vrot.slane %v697_v55, 2 }
 0x2cc   :  { %v699_v63 = vadd.f32 %v698_v59, %v697_v55  ;;  %v681_v0 = vrot.slane %v680_v57, 1 }
 0x2ce   :  { %v700_v7 = vrot.slane %v699_v63, 1  ;;  %v682_v8 = vadd.f32 %v681_v0, %v680_v57 }
 0x2d0   :  { %v701_v11 = vadd.f32 %v700_v7, %v699_v63  ;;  %v683_v19 = vsel %vm314_vm6, %v675_v13, %v682_v8 }
 0x2d2   :  { %v702_v14 = vsel %vm314_vm6, %v692_v10, %v701_v11 }
 0x2d3   :  { %v704_v17 = vrot.slane %v702_v14, 6 }
 0x2d5   :  { %v706_v20 = vsel %vm338_vm5, %v683_v19, %v704_v17 }
 0x2d6   :  { %739 = vmatmul.f32.vlgmr.msrb.gmra.mxu3 %v706_v20 }
 0x359   :  { %v740_v21 = vpop.f32.mrf.mxu3 }
 0x35a   :  { %872 = vmatmul.msk.f32.vlgmr.msra.gmra.mxu3 %vm377_vm7, %v740_v21 }
 0x3dd   :  { %v767_v22 = vpop.f32.mrf.mxu3 }
 0x3de   :  { %v770_v28 = vmul.f32 %v767_v22, %v767_v22 }
 0x3e0   :  { %v772_v29 = vrot.slane %v770_v28, 6 }
 0x3e2   :  { %v774_v30 = vsub.f32 %v767_v22, %v772_v29 }
 0x3e4   :  { %v775_v58 = vadd.f32 1e-05, %v774_v30 }
 0x3e6   :  { %895 = vrsqrt.f32 %v775_v58  ;;  %vm782_vm0 = vweird.f32 %v775_v58 }
 0x3ec   :  { %v896_v60 = vpop.eup %895 }
 0x3ed   :  { %v777_v61 = vmul.f32 %v896_v60, %v775_v58  ;;  %vm783_vm15 = vweird.f32 %v896_v60 }
 0x3ee   :  { %vm784_vm1 = vmor %vm782_vm0, %vm783_vm15 }
 0x3ef   :  { %v778_v62 = vmul.f32 %v896_v60, %v777_v61 }
 0x3f1   :  { %v779_v1 = vmul.f32 0.5, %v778_v62 }
 0x3f3   :  { %v780_v3 = vsub.f32 1.5, %v779_v1 }
 0x3f5   :  { %v781_v12 = vmul.f32 %v896_v60, %v780_v3 }
 0x3f7   :  { %v785_v15 = vsel %vm784_vm1, %v896_v60, %v781_v12 }
 0x3f8   :  { %v790_v16 = vmul.f32 %v891_v5, %v785_v15 }
 0x3fa   :  { %v793_v18 = vrot.slane %v790_v16, 2  ;;  %v800_v25 = vperm.slane %v790_v16, 2  ;;  %v812_v32 = vperm.slane %v790_v16, 3 }
 0x3fc   :  { %v795_v31 = vmul.f32 %v793_v18, %v767_v22  ;;  %v801_v34 = vmul.f32 %v800_v25, %v1271_v9  ;;  %v802_v35 = vmul.f32 %v800_v25, %v1269_v6  ;;  %v813_v36 = vmul.f32 %v812_v32, %v1283_v24 }
 0x3fd   :  { %v814_v26 = vmul.f32 %v812_v32, %v668_v46 }
 0x3fe   :  { %v799_v33 = vsub.f32 %v892_v23, %v795_v31 }
 0x400   :  { %v803_v27 = vperm.slane %v799_v33, 0  ;;  %v815_v37 = vperm.slane %v799_v33, 1 }
 0x402   :  { %v804_v38 = vadd.f32 %v803_v27, %v801_v34  ;;  %v805_v39 = vadd.f32 %v803_v27, %v802_v35  ;;  %v816_v43 = vadd.f32 %v815_v37, %v813_v36  ;;  %v817_v40 = vadd.f32 %v815_v37, %v814_v26 }
 0x404   :  { %vm806_vm2 = vcmp.gt.f32.partialorder %v804_v38, 0.0  ;;  %vm807_vm3 = vcmp.gt.f32.partialorder %v805_v39, 0.0  ;;  %v808_v9 = vmul.f32 0.2, %v804_v38  ;;  %v809_v41 = vmul.f32 0.2, %v805_v39 }
 0x405   :  { %vm818_vm4 = vcmp.gt.f32.partialorder %v816_v43, 0.0  ;;  %vm819_vm5 = vcmp.gt.f32.partialorder %v817_v40, 0.0  ;;  %v820_v6 = vmul.f32 0.2, %v816_v43  ;;  %v821_v24 = vmul.f32 0.2, %v817_v40 }
 0x406   :  { %v810_v46 = vsel %vm806_vm2, %v804_v38, %v808_v9  ;;  %v811_v42 = vsel %vm807_vm3, %v805_v39, %v809_v41 }
 0x407   :  { %v822_v44 = vsel %vm818_vm4, %v816_v43, %v820_v6  ;;  %v823_v45 = vsel %vm819_vm5, %v817_v40, %v821_v24  ;;  %824 = vst [vmem:[#allocation9] sm:$0xff] %v810_v46 }
 0x408   :  { %825 = vst [vmem:[#allocation9 + $0x8] sm:$0xff] %v811_v42 }
 0x409   :  { %827 = vst [vmem:[#allocation9 + $0x10] sm:$0xff] %v822_v44 }
 0x40a   :  { %828 = vst [vmem:[#allocation9 + $0x18] sm:$0xff] %v823_v45 }
 0x40b   :  { %841 = dma.vmem_to_hbm [thread:$0]  %s834_s17, 512, %s836_s19, [#allocation6], %s976_s25, %s976_s25, %s977_s26  }
 0x40c   :  { %973 = dma.done.wait [#allocation6], 512  }
 0x40d   :  { %974 = vsyncadd [#allocation6], 4294966784 }
 0x40e   :  { %846 = vsyncpa [#allocation5], 1 }
 0x40f   :  { %847 = vsyncpa [#allocation8], 1 }
 0x410   :  { %848 = vsyncpa [#allocation6], 1 }

</bundles_post_ra>
